<compile_context>
chip_gen: v7x
topology: tpu7x:2x2x1
jax: 0.10.0
libtpu: 0.0.40
codegen_flags: <defaults>
</compile_context>

<pallas_src>
import functools

import jax
import jax.numpy as jnp
from jax import lax
from jax.experimental import pallas as pl
from jax.experimental.pallas import tpu as pltpu


def bigru_kernel(xs_ref, h0_ref, wih_vs_ref, whh_vs_ref, bias_ref, bhhn_ref,
                 out_ref, hn_ref, hs_s):
    """Whole bidirectional GRU in one kernel invocation (no grid).

    xs_ref:     (T*2B, 2H)  block-diagonal stacked inputs (built in wrapper):
                            rows [t*2B, t*2B+B)    = [ x[:, t, :]       | 0 ]
                            rows [t*2B+B, (t+1)2B) = [ 0 | x[:, T-1-t, :] ]
    h0_ref:     (2B, H)     initial hidden, rows 0:B fwd, rows B:2B bwd
    wih_vs_ref: (2H, 3H)    [wih_f; wih_b] stacked on the contraction dim
    whh_vs_ref: (2H, 3H)    [whh_f; whh_b] stacked on the contraction dim
    bias_ref:   (2B, 3H)    bih + bhh(r,z) pre-folded, per direction
    bhhn_ref:   (2B, 3H)    bhh n-gate bias, zero-padded into the n third
    out_ref:    (T, B, 2H)  fused output [forward | backward]
    hn_ref:     (2B, H)     final hidden state (wrapper reshapes to (2, B, H))
    hs_s:       (T, 2B, H)  VMEM scratch: per-step hidden states
    """
    T, B, H2 = out_ref.shape
    H = H2 // 2
    B2 = 2 * B

    # ---- Stage 1: one MXU pass = input projection for both directions ----
    gi_all = jnp.dot(xs_ref[...], wih_vs_ref[...],
                     preferred_element_type=jnp.float32)            # (T*2B, 3H)
    # Broadcast the per-direction bias over time, once, off the serial chain.
    gi_all = gi_all + jnp.concatenate([bias_ref[...]] * T, axis=0)   # (T*2B, 3H)

    whh = whh_vs_ref[...]      # (2H, 3H), stays vreg-resident across the loop
    bhhn = bhhn_ref[...]       # (2B, 3H), zeros in the r/z thirds

    # Block-diagonal mask for the wide carry, built in-kernel (no DMA).
    row = lax.broadcasted_iota(jnp.int32, (B2, 2 * H), 0)
    col = lax.broadcasted_iota(jnp.int32, (B2, 2 * H), 1)
    dmask = (((row < B) & (col < H)) | ((row >= B) & (col >= H))
             ).astype(jnp.float32)                                   # (2B, 2H)

    # Stacked hidden carry: rows 0:B forward, rows B:2B backward.
    h = h0_ref[...]                                                  # (2B, H)

    # ---- Stage 2: recurrence, fully unrolled (T is a static Python int) --
    for t in range(T):
        gi_t = gi_all[t * B2:(t + 1) * B2, :]                        # (2B, 3H)

        # Block-diagonal recurrent matmul: [hf|0; 0|hb] @ [whh_f; whh_b],
        # with bhh_n folded in full-width (lane-aligned add, zeros in r/z).
        hw = jnp.concatenate([h, h], axis=-1) * dmask                # (2B, 2H)
        gh = jnp.dot(hw, whh, preferred_element_type=jnp.float32) + bhhn

        # PyTorch GRU cell, gate order [r, z, n]; r/z sigmoid fused (one EUP op).
        rz = jax.nn.sigmoid(gi_t[:, 0:2 * H] + gh[:, 0:2 * H])
        r = rz[:, 0:H]
        z = rz[:, H:2 * H]
        n = jnp.tanh(gi_t[:, 2 * H:] + r * gh[:, 2 * H:])
        h = n + z * (h - n)                        # == (1 - z) * n + z * h

        # Single sublane-dense (2B, H) store per step; layout fix-up happens
        # after the loop so stores stay off the recurrent chain.
        hs_s[t] = h

    hn_ref[...] = h                                                  # (2B, H)

    # ---- Epilogue: assemble (T, B, 2H) = [forward | reversed backward] ----
    out_ref[:, :, 0:H] = hs_s[:, 0:B, :]
    for t in range(T):
        out_ref[t, :, H:2 * H] = hs_s[T - 1 - t, B:B2, :]


def sent_model_forward(x, hidden, packed):
    """x: (batch, seq, H) float32, hidden: (2, batch, H) float32.

    Returns (output, h_n): output (seq, batch, 2H), h_n (2, batch, H) —
    matching `SentModel.forward`.  Wrapper work is layout plumbing only
    (transpose/reverse/concat of ~16 KB); all matmuls and gate math run in the
    single pallas_call.
    """
    B, T, H = x.shape

    # Block-diagonal stacked-input slab (see kernel docstring).
    x_tm = jnp.transpose(x, (1, 0, 2))                      # (T, B, H)
    zeros = jnp.zeros_like(x_tm)
    xs = jnp.concatenate(
        [jnp.concatenate([x_tm, zeros], axis=-1),           # fwd rows: [x_t | 0]
         jnp.concatenate([zeros, x_tm[::-1]], axis=-1)],    # bwd rows: [0 | x_rev]
        axis=1,
    ).reshape(T * 2 * B, 2 * H)
    h0 = hidden.reshape(2 * B, H)                           # contiguous, free

    vmem_spec = pl.BlockSpec(memory_space=pltpu.MemorySpace.VMEM)

    out, hn = pl.pallas_call(
        bigru_kernel,
        out_shape=(
            jax.ShapeDtypeStruct((T, B, 2 * H), jnp.float32),
            jax.ShapeDtypeStruct((2 * B, H), jnp.float32),
        ),
        in_specs=[vmem_spec] * 6,
        out_specs=(vmem_spec, vmem_spec),
        scratch_shapes=[
            pltpu.VMEM((T, 2 * B, H), jnp.float32),   # per-step hidden states
        ],
    )(xs, h0, packed["wih_vs"], packed["whh_vs"], packed["bias"], packed["bhhn_pad"])

    return out, hn.reshape(2, B, H)


def init_params(key, hidden_dim):
    """Raw GRU params, PyTorch-style uniform(-1/sqrt(H), 1/sqrt(H)).

    PyTorch stores weight_ih/weight_hh as (3H, H) with gate order [r, z, n];
    here they are stored transposed (H, 3H) so kernels do x @ W directly.
    Biases stored as (1, 3H).
    """
    H = hidden_dim
    bound = 1.0 / (H ** 0.5)
    keys = jax.random.split(key, 8)

    def u(k, shape):
        return jax.random.uniform(k, shape, jnp.float32, -bound, bound)

    return {
        "wih_f": u(keys[0], (H, 3 * H)),
        "whh_f": u(keys[1], (H, 3 * H)),
        "bih_f": u(keys[2], (1, 3 * H)),
        "bhh_f": u(keys[3], (1, 3 * H)),
        "wih_b": u(keys[4], (H, 3 * H)),
        "whh_b": u(keys[5], (H, 3 * H)),
        "bih_b": u(keys[6], (1, 3 * H)),
        "bhh_b": u(keys[7], (1, 3 * H)),
    }


def pack_params(params, batch_size):
    """One-time host-side packing into the kernel's fused layout."""
    H = params["wih_f"].shape[0]
    B = batch_size

    wih_vs = jnp.concatenate([params["wih_f"], params["wih_b"]], axis=0)   # (2H, 3H)
    whh_vs = jnp.concatenate([params["whh_f"], params["whh_b"]], axis=0)   # (2H, 3H)

    # Fold bih (all gates) + bhh (r, z gates only) into one per-direction bias.
    zero_n = jnp.zeros((1, H), jnp.float32)
    bias_f = params["bih_f"] + jnp.concatenate([params["bhh_f"][:, :2 * H], zero_n], axis=1)
    bias_b = params["bih_b"] + jnp.concatenate([params["bhh_b"][:, :2 * H], zero_n], axis=1)
    bias = jnp.concatenate([jnp.broadcast_to(bias_f, (B, 3 * H)),
                            jnp.broadcast_to(bias_b, (B, 3 * H))], axis=0)   # (2B, 3H)

    # bhh_n zero-padded to full gate width so the in-kernel add is lane-aligned.
    zero_rz = jnp.zeros((1, 2 * H), jnp.float32)
    bhhn_f = jnp.concatenate([zero_rz, params["bhh_f"][:, 2 * H:]], axis=1)  # (1, 3H)
    bhhn_b = jnp.concatenate([zero_rz, params["bhh_b"][:, 2 * H:]], axis=1)  # (1, 3H)
    bhhn_pad = jnp.concatenate([jnp.broadcast_to(bhhn_f, (B, 3 * H)),
                                jnp.broadcast_to(bhhn_b, (B, 3 * H))], axis=0)  # (2B, 3H)

    return {"wih_vs": wih_vs, "whh_vs": whh_vs, "bias": bias, "bhhn_pad": bhhn_pad}


def _reference_bigru(x, hidden, params):
    """Pure-JAX reference matching torch.nn.GRU(bidirectional=True) semantics."""
    B, T, H = x.shape
    x_tm = jnp.transpose(x, (1, 0, 2))

    def cell(x_t, h, wih, whh, bih, bhh):
        gi = x_t @ wih + bih
        gh = h @ whh + bhh
        r = jax.nn.sigmoid(gi[:, :H] + gh[:, :H])
        z = jax.nn.sigmoid(gi[:, H:2 * H] + gh[:, H:2 * H])
        n = jnp.tanh(gi[:, 2 * H:] + r * gh[:, 2 * H:])
        return (1.0 - z) * n + z * h

    def run(xs, h0, wih, whh, bih, bhh):
        def step(h, x_t):
            h_new = cell(x_t, h, wih, whh, bih, bhh)
            return h_new, h_new
        h_last, outs = lax.scan(step, h0, xs)
        return outs, h_last

    out_f, hf = run(x_tm, hidden[0], params["wih_f"], params["whh_f"],
                    params["bih_f"], params["bhh_f"])
    out_b_rev, hb = run(x_tm[::-1], hidden[1], params["wih_b"], params["whh_b"],
                        params["bih_b"], params["bhh_b"])
    out_b = out_b_rev[::-1]
    return jnp.concatenate([out_f, out_b], axis=-1), jnp.stack([hf, hb], axis=0)


if __name__ == "__main__":
    batch_size = 4
    seq_len = 8
    hidden_dim = 32

    key = jax.random.PRNGKey(0)
    k_x, k_p = jax.random.split(key)

    # Input as the PyTorch module expects pre-transpose: (batch, seq, hidden)
    x = jax.random.normal(k_x, (batch_size, seq_len, hidden_dim), jnp.float32)
    # init_hidden(): zeros of shape (2, batch, hidden)
    hidden0 = jnp.zeros((2, batch_size, hidden_dim), jnp.float32)

    params = init_params(k_p, hidden_dim)
    packed = pack_params(params, batch_size)

    fwd = jax.jit(functools.partial(sent_model_forward, packed=packed))
    output, h_n = fwd(x, hidden0)
    output = jax.block_until_ready(output)
    h_n = jax.block_until_ready(h_n)

    # Sanity check against a pure-JAX reference implementation.
    ref_out, ref_hn = _reference_bigru(x, hidden0, params)
    assert output.shape == (seq_len, batch_size, 2 * hidden_dim)
    assert h_n.shape == (2, batch_size, hidden_dim)
    assert jnp.allclose(output, ref_out, atol=3e-5, rtol=1e-5)
    assert jnp.allclose(h_n, ref_hn, atol=3e-5, rtol=1e-5)

    print("KERNEL_OK")
</pallas_src>

<mosaic_0001>
module attributes {stable_mosaic.version = 11 : i64} {
  func.func @bigru_kernel(%arg0: memref<64x64xf32, #tpu.memory_space<vmem>>, %arg1: memref<8x32xf32, #tpu.memory_space<vmem>>, %arg2: memref<64x96xf32, #tpu.memory_space<vmem>>, %arg3: memref<64x96xf32, #tpu.memory_space<vmem>>, %arg4: memref<8x96xf32, #tpu.memory_space<vmem>>, %arg5: memref<8x96xf32, #tpu.memory_space<vmem>>, %arg6: memref<8x4x64xf32, #tpu.memory_space<vmem>>, %arg7: memref<8x32xf32, #tpu.memory_space<vmem>>, %arg8: memref<8x8x32xf32, #tpu.memory_space<vmem>>) attributes {dimension_semantics = [], scalar_prefetch = 0 : i64, scratch_operands = 1 : i64, tpu.core_type = #tpu.core_type<tc>} {
    %c0 = arith.constant 0 : index
    %c0_0 = arith.constant 0 : index
    %0 = vector.load %arg0[%c0, %c0_0] : memref<64x64xf32, #tpu.memory_space<vmem>>, vector<64x64xf32>
    %c0_1 = arith.constant 0 : index
    %c0_2 = arith.constant 0 : index
    %1 = vector.load %arg2[%c0_1, %c0_2] : memref<64x96xf32, #tpu.memory_space<vmem>>, vector<64x96xf32>
    %cst = arith.constant dense<0.000000e+00> : vector<64x96xf32>
    %2 = tpu.matmul %0, %1, %cst {dimension_numbers = #tpu.dot_dimension_numbers<[1], [0], [0], [1], [0, 0, 1, 1], [], []>} : vector<64x64xf32>, vector<64x96xf32>, vector<64x96xf32> -> vector<64x96xf32>
    %c0_3 = arith.constant 0 : index
    %c0_4 = arith.constant 0 : index
    %3 = vector.load %arg4[%c0_3, %c0_4] : memref<8x96xf32, #tpu.memory_space<vmem>>, vector<8x96xf32>
    %4 = tpu.concatenate %3, %3, %3, %3, %3, %3, %3, %3 in 0 : vector<8x96xf32>, vector<8x96xf32>, vector<8x96xf32>, vector<8x96xf32>, vector<8x96xf32>, vector<8x96xf32>, vector<8x96xf32>, vector<8x96xf32> -> vector<64x96xf32>
    %5 = arith.addf %2, %4 : vector<64x96xf32>
    %c0_5 = arith.constant 0 : index
    %c0_6 = arith.constant 0 : index
    %6 = vector.load %arg3[%c0_5, %c0_6] : memref<64x96xf32, #tpu.memory_space<vmem>>, vector<64x96xf32>
    %c0_7 = arith.constant 0 : index
    %c0_8 = arith.constant 0 : index
    %7 = vector.load %arg5[%c0_7, %c0_8] : memref<8x96xf32, #tpu.memory_space<vmem>>, vector<8x96xf32>
    %8 = tpu.iota {dimensions = array<i32: 0>} : vector<8x64xi32>
    %9 = tpu.iota {dimensions = array<i32: 1>} : vector<8x64xi32>
    %c4_i32 = arith.constant 4 : i32
    %10 = vector.broadcast %c4_i32 : i32 to vector<8x64xi32>
    %11 = arith.cmpi slt, %8, %10 : vector<8x64xi32>
    %c32_i32 = arith.constant 32 : i32
    %12 = vector.broadcast %c32_i32 : i32 to vector<8x64xi32>
    %13 = arith.cmpi slt, %9, %12 : vector<8x64xi32>
    %14 = arith.andi %11, %13 : vector<8x64xi1>
    %c4_i32_9 = arith.constant 4 : i32
    %15 = vector.broadcast %c4_i32_9 : i32 to vector<8x64xi32>
    %16 = arith.cmpi sge, %8, %15 : vector<8x64xi32>
    %c32_i32_10 = arith.constant 32 : i32
    %17 = vector.broadcast %c32_i32_10 : i32 to vector<8x64xi32>
    %18 = arith.cmpi sge, %9, %17 : vector<8x64xi32>
    %19 = arith.andi %16, %18 : vector<8x64xi1>
    %20 = arith.ori %14, %19 : vector<8x64xi1>
    %21 = arith.extui %20 : vector<8x64xi1> to vector<8x64xi32>
    %22 = arith.sitofp %21 : vector<8x64xi32> to vector<8x64xf32>
    %c0_11 = arith.constant 0 : index
    %c0_12 = arith.constant 0 : index
    %23 = vector.load %arg1[%c0_11, %c0_12] : memref<8x32xf32, #tpu.memory_space<vmem>>, vector<8x32xf32>
    %24 = vector.extract_strided_slice %5 {offsets = [0, 0], sizes = [8, 96], strides = [1, 1]} : vector<64x96xf32> to vector<8x96xf32>
    %25 = tpu.concatenate %23, %23 in 1 : vector<8x32xf32>, vector<8x32xf32> -> vector<8x64xf32>
    %26 = arith.mulf %25, %22 : vector<8x64xf32>
    %cst_13 = arith.constant dense<0.000000e+00> : vector<8x96xf32>
    %27 = tpu.matmul %26, %6, %cst_13 {dimension_numbers = #tpu.dot_dimension_numbers<[1], [0], [0], [1], [0, 0, 1, 1], [], []>} : vector<8x64xf32>, vector<64x96xf32>, vector<8x96xf32> -> vector<8x96xf32>
    %28 = arith.addf %27, %7 : vector<8x96xf32>
    %29 = vector.extract_strided_slice %24 {offsets = [0, 0], sizes = [8, 64], strides = [1, 1]} : vector<8x96xf32> to vector<8x64xf32>
    %30 = vector.extract_strided_slice %28 {offsets = [0, 0], sizes = [8, 64], strides = [1, 1]} : vector<8x96xf32> to vector<8x64xf32>
    %31 = arith.addf %29, %30 : vector<8x64xf32>
    %32 = arith.negf %31 : vector<8x64xf32>
    %33 = math.exp %32 : vector<8x64xf32>
    %cst_14 = arith.constant 1.000000e+00 : f32
    %34 = vector.broadcast %cst_14 : f32 to vector<8x64xf32>
    %35 = arith.addf %34, %33 : vector<8x64xf32>
    %36 = arith.divf %34, %35 : vector<8x64xf32>
    %37 = vector.extract_strided_slice %36 {offsets = [0, 0], sizes = [8, 32], strides = [1, 1]} : vector<8x64xf32> to vector<8x32xf32>
    %38 = vector.extract_strided_slice %36 {offsets = [0, 32], sizes = [8, 32], strides = [1, 1]} : vector<8x64xf32> to vector<8x32xf32>
    %39 = vector.extract_strided_slice %24 {offsets = [0, 64], sizes = [8, 32], strides = [1, 1]} : vector<8x96xf32> to vector<8x32xf32>
    %40 = vector.extract_strided_slice %28 {offsets = [0, 64], sizes = [8, 32], strides = [1, 1]} : vector<8x96xf32> to vector<8x32xf32>
    %41 = arith.mulf %37, %40 : vector<8x32xf32>
    %42 = arith.addf %39, %41 : vector<8x32xf32>
    %43 = math.tanh %42 : vector<8x32xf32>
    %44 = arith.subf %23, %43 : vector<8x32xf32>
    %45 = arith.mulf %38, %44 : vector<8x32xf32>
    %46 = arith.addf %43, %45 : vector<8x32xf32>
    %c0_15 = arith.constant 0 : index
    %c0_16 = arith.constant 0 : index
    %c0_17 = arith.constant 0 : index
    %47 = vector.load %arg8[%c0_15, %c0_16, %c0_17] : memref<8x8x32xf32, #tpu.memory_space<vmem>>, vector<1x8x32xf32>
    %48 = vector.shape_cast %47 : vector<1x8x32xf32> to vector<8x32xf32>
    %49 = vector.shape_cast %46 : vector<8x32xf32> to vector<1x8x32xf32>
    tpu.vector_store %arg8[%c0_15, %c0_16, %c0_17], %49 {strides = array<i32>} : memref<8x8x32xf32, #tpu.memory_space<vmem>>, vector<1x8x32xf32>,
    %50 = vector.extract_strided_slice %5 {offsets = [8, 0], sizes = [8, 96], strides = [1, 1]} : vector<64x96xf32> to vector<8x96xf32>
    %51 = tpu.concatenate %46, %46 in 1 : vector<8x32xf32>, vector<8x32xf32> -> vector<8x64xf32>
    %52 = arith.mulf %51, %22 : vector<8x64xf32>
    %cst_18 = arith.constant dense<0.000000e+00> : vector<8x96xf32>
    %53 = tpu.matmul %52, %6, %cst_18 {dimension_numbers = #tpu.dot_dimension_numbers<[1], [0], [0], [1], [0, 0, 1, 1], [], []>} : vector<8x64xf32>, vector<64x96xf32>, vector<8x96xf32> -> vector<8x96xf32>
    %54 = arith.addf %53, %7 : vector<8x96xf32>
    %55 = vector.extract_strided_slice %50 {offsets = [0, 0], sizes = [8, 64], strides = [1, 1]} : vector<8x96xf32> to vector<8x64xf32>
    %56 = vector.extract_strided_slice %54 {offsets = [0, 0], sizes = [8, 64], strides = [1, 1]} : vector<8x96xf32> to vector<8x64xf32>
    %57 = arith.addf %55, %56 : vector<8x64xf32>
    %58 = arith.negf %57 : vector<8x64xf32>
    %59 = math.exp %58 : vector<8x64xf32>
    %cst_19 = arith.constant 1.000000e+00 : f32
    %60 = vector.broadcast %cst_19 : f32 to vector<8x64xf32>
    %61 = arith.addf %60, %59 : vector<8x64xf32>
    %62 = arith.divf %60, %61 : vector<8x64xf32>
    %63 = vector.extract_strided_slice %62 {offsets = [0, 0], sizes = [8, 32], strides = [1, 1]} : vector<8x64xf32> to vector<8x32xf32>
    %64 = vector.extract_strided_slice %62 {offsets = [0, 32], sizes = [8, 32], strides = [1, 1]} : vector<8x64xf32> to vector<8x32xf32>
    %65 = vector.extract_strided_slice %50 {offsets = [0, 64], sizes = [8, 32], strides = [1, 1]} : vector<8x96xf32> to vector<8x32xf32>
    %66 = vector.extract_strided_slice %54 {offsets = [0, 64], sizes = [8, 32], strides = [1, 1]} : vector<8x96xf32> to vector<8x32xf32>
    %67 = arith.mulf %63, %66 : vector<8x32xf32>
    %68 = arith.addf %65, %67 : vector<8x32xf32>
    %69 = math.tanh %68 : vector<8x32xf32>
    %70 = arith.subf %46, %69 : vector<8x32xf32>
    %71 = arith.mulf %64, %70 : vector<8x32xf32>
    %72 = arith.addf %69, %71 : vector<8x32xf32>
    %c1 = arith.constant 1 : index
    %c0_20 = arith.constant 0 : index
    %c0_21 = arith.constant 0 : index
    %73 = vector.load %arg8[%c1, %c0_20, %c0_21] : memref<8x8x32xf32, #tpu.memory_space<vmem>>, vector<1x8x32xf32>
    %74 = vector.shape_cast %73 : vector<1x8x32xf32> to vector<8x32xf32>
    %75 = vector.shape_cast %72 : vector<8x32xf32> to vector<1x8x32xf32>
    tpu.vector_store %arg8[%c1, %c0_20, %c0_21], %75 {strides = array<i32>} : memref<8x8x32xf32, #tpu.memory_space<vmem>>, vector<1x8x32xf32>,
    %76 = vector.extract_strided_slice %5 {offsets = [16, 0], sizes = [8, 96], strides = [1, 1]} : vector<64x96xf32> to vector<8x96xf32>
    %77 = tpu.concatenate %72, %72 in 1 : vector<8x32xf32>, vector<8x32xf32> -> vector<8x64xf32>
    %78 = arith.mulf %77, %22 : vector<8x64xf32>
    %cst_22 = arith.constant dense<0.000000e+00> : vector<8x96xf32>
    %79 = tpu.matmul %78, %6, %cst_22 {dimension_numbers = #tpu.dot_dimension_numbers<[1], [0], [0], [1], [0, 0, 1, 1], [], []>} : vector<8x64xf32>, vector<64x96xf32>, vector<8x96xf32> -> vector<8x96xf32>
    %80 = arith.addf %79, %7 : vector<8x96xf32>
    %81 = vector.extract_strided_slice %76 {offsets = [0, 0], sizes = [8, 64], strides = [1, 1]} : vector<8x96xf32> to vector<8x64xf32>
    %82 = vector.extract_strided_slice %80 {offsets = [0, 0], sizes = [8, 64], strides = [1, 1]} : vector<8x96xf32> to vector<8x64xf32>
    %83 = arith.addf %81, %82 : vector<8x64xf32>
    %84 = arith.negf %83 : vector<8x64xf32>
    %85 = math.exp %84 : vector<8x64xf32>
    %cst_23 = arith.constant 1.000000e+00 : f32
    %86 = vector.broadcast %cst_23 : f32 to vector<8x64xf32>
    %87 = arith.addf %86, %85 : vector<8x64xf32>
    %88 = arith.divf %86, %87 : vector<8x64xf32>
    %89 = vector.extract_strided_slice %88 {offsets = [0, 0], sizes = [8, 32], strides = [1, 1]} : vector<8x64xf32> to vector<8x32xf32>
    %90 = vector.extract_strided_slice %88 {offsets = [0, 32], sizes = [8, 32], strides = [1, 1]} : vector<8x64xf32> to vector<8x32xf32>
    %91 = vector.extract_strided_slice %76 {offsets = [0, 64], sizes = [8, 32], strides = [1, 1]} : vector<8x96xf32> to vector<8x32xf32>
    %92 = vector.extract_strided_slice %80 {offsets = [0, 64], sizes = [8, 32], strides = [1, 1]} : vector<8x96xf32> to vector<8x32xf32>
    %93 = arith.mulf %89, %92 : vector<8x32xf32>
    %94 = arith.addf %91, %93 : vector<8x32xf32>
    %95 = math.tanh %94 : vector<8x32xf32>
    %96 = arith.subf %72, %95 : vector<8x32xf32>
    %97 = arith.mulf %90, %96 : vector<8x32xf32>
    %98 = arith.addf %95, %97 : vector<8x32xf32>
    %c2 = arith.constant 2 : index
    %c0_24 = arith.constant 0 : index
    %c0_25 = arith.constant 0 : index
    %99 = vector.load %arg8[%c2, %c0_24, %c0_25] : memref<8x8x32xf32, #tpu.memory_space<vmem>>, vector<1x8x32xf32>
    %100 = vector.shape_cast %99 : vector<1x8x32xf32> to vector<8x32xf32>
    %101 = vector.shape_cast %98 : vector<8x32xf32> to vector<1x8x32xf32>
    tpu.vector_store %arg8[%c2, %c0_24, %c0_25], %101 {strides = array<i32>} : memref<8x8x32xf32, #tpu.memory_space<vmem>>, vector<1x8x32xf32>,
    %102 = vector.extract_strided_slice %5 {offsets = [24, 0], sizes = [8, 96], strides = [1, 1]} : vector<64x96xf32> to vector<8x96xf32>
    %103 = tpu.concatenate %98, %98 in 1 : vector<8x32xf32>, vector<8x32xf32> -> vector<8x64xf32>
    %104 = arith.mulf %103, %22 : vector<8x64xf32>
    %cst_26 = arith.constant dense<0.000000e+00> : vector<8x96xf32>
    %105 = tpu.matmul %104, %6, %cst_26 {dimension_numbers = #tpu.dot_dimension_numbers<[1], [0], [0], [1], [0, 0, 1, 1], [], []>} : vector<8x64xf32>, vector<64x96xf32>, vector<8x96xf32> -> vector<8x96xf32>
    %106 = arith.addf %105, %7 : vector<8x96xf32>
    %107 = vector.extract_strided_slice %102 {offsets = [0, 0], sizes = [8, 64], strides = [1, 1]} : vector<8x96xf32> to vector<8x64xf32>
    %108 = vector.extract_strided_slice %106 {offsets = [0, 0], sizes = [8, 64], strides = [1, 1]} : vector<8x96xf32> to vector<8x64xf32>
    %109 = arith.addf %107, %108 : vector<8x64xf32>
    %110 = arith.negf %109 : vector<8x64xf32>
    %111 = math.exp %110 : vector<8x64xf32>
    %cst_27 = arith.constant 1.000000e+00 : f32
    %112 = vector.broadcast %cst_27 : f32 to vector<8x64xf32>
    %113 = arith.addf %112, %111 : vector<8x64xf32>
    %114 = arith.divf %112, %113 : vector<8x64xf32>
    %115 = vector.extract_strided_slice %114 {offsets = [0, 0], sizes = [8, 32], strides = [1, 1]} : vector<8x64xf32> to vector<8x32xf32>
    %116 = vector.extract_strided_slice %114 {offsets = [0, 32], sizes = [8, 32], strides = [1, 1]} : vector<8x64xf32> to vector<8x32xf32>
    %117 = vector.extract_strided_slice %102 {offsets = [0, 64], sizes = [8, 32], strides = [1, 1]} : vector<8x96xf32> to vector<8x32xf32>
    %118 = vector.extract_strided_slice %106 {offsets = [0, 64], sizes = [8, 32], strides = [1, 1]} : vector<8x96xf32> to vector<8x32xf32>
    %119 = arith.mulf %115, %118 : vector<8x32xf32>
    %120 = arith.addf %117, %119 : vector<8x32xf32>
    %121 = math.tanh %120 : vector<8x32xf32>
    %122 = arith.subf %98, %121 : vector<8x32xf32>
    %123 = arith.mulf %116, %122 : vector<8x32xf32>
    %124 = arith.addf %121, %123 : vector<8x32xf32>
    %c3 = arith.constant 3 : index
    %c0_28 = arith.constant 0 : index
    %c0_29 = arith.constant 0 : index
    %125 = vector.load %arg8[%c3, %c0_28, %c0_29] : memref<8x8x32xf32, #tpu.memory_space<vmem>>, vector<1x8x32xf32>
    %126 = vector.shape_cast %125 : vector<1x8x32xf32> to vector<8x32xf32>
    %127 = vector.shape_cast %124 : vector<8x32xf32> to vector<1x8x32xf32>
    tpu.vector_store %arg8[%c3, %c0_28, %c0_29], %127 {strides = array<i32>} : memref<8x8x32xf32, #tpu.memory_space<vmem>>, vector<1x8x32xf32>,
    %128 = vector.extract_strided_slice %5 {offsets = [32, 0], sizes = [8, 96], strides = [1, 1]} : vector<64x96xf32> to vector<8x96xf32>
    %129 = tpu.concatenate %124, %124 in 1 : vector<8x32xf32>, vector<8x32xf32> -> vector<8x64xf32>
    %130 = arith.mulf %129, %22 : vector<8x64xf32>
    %cst_30 = arith.constant dense<0.000000e+00> : vector<8x96xf32>
    %131 = tpu.matmul %130, %6, %cst_30 {dimension_numbers = #tpu.dot_dimension_numbers<[1], [0], [0], [1], [0, 0, 1, 1], [], []>} : vector<8x64xf32>, vector<64x96xf32>, vector<8x96xf32> -> vector<8x96xf32>
    %132 = arith.addf %131, %7 : vector<8x96xf32>
    %133 = vector.extract_strided_slice %128 {offsets = [0, 0], sizes = [8, 64], strides = [1, 1]} : vector<8x96xf32> to vector<8x64xf32>
    %134 = vector.extract_strided_slice %132 {offsets = [0, 0], sizes = [8, 64], strides = [1, 1]} : vector<8x96xf32> to vector<8x64xf32>
    %135 = arith.addf %133, %134 : vector<8x64xf32>
    %136 = arith.negf %135 : vector<8x64xf32>
    %137 = math.exp %136 : vector<8x64xf32>
    %cst_31 = arith.constant 1.000000e+00 : f32
    %138 = vector.broadcast %cst_31 : f32 to vector<8x64xf32>
    %139 = arith.addf %138, %137 : vector<8x64xf32>
    %140 = arith.divf %138, %139 : vector<8x64xf32>
    %141 = vector.extract_strided_slice %140 {offsets = [0, 0], sizes = [8, 32], strides = [1, 1]} : vector<8x64xf32> to vector<8x32xf32>
    %142 = vector.extract_strided_slice %140 {offsets = [0, 32], sizes = [8, 32], strides = [1, 1]} : vector<8x64xf32> to vector<8x32xf32>
    %143 = vector.extract_strided_slice %128 {offsets = [0, 64], sizes = [8, 32], strides = [1, 1]} : vector<8x96xf32> to vector<8x32xf32>
    %144 = vector.extract_strided_slice %132 {offsets = [0, 64], sizes = [8, 32], strides = [1, 1]} : vector<8x96xf32> to vector<8x32xf32>
    %145 = arith.mulf %141, %144 : vector<8x32xf32>
    %146 = arith.addf %143, %145 : vector<8x32xf32>
    %147 = math.tanh %146 : vector<8x32xf32>
    %148 = arith.subf %124, %147 : vector<8x32xf32>
    %149 = arith.mulf %142, %148 : vector<8x32xf32>
    %150 = arith.addf %147, %149 : vector<8x32xf32>
    %c4 = arith.constant 4 : index
    %c0_32 = arith.constant 0 : index
    %c0_33 = arith.constant 0 : index
    %151 = vector.load %arg8[%c4, %c0_32, %c0_33] : memref<8x8x32xf32, #tpu.memory_space<vmem>>, vector<1x8x32xf32>
    %152 = vector.shape_cast %151 : vector<1x8x32xf32> to vector<8x32xf32>
    %153 = vector.shape_cast %150 : vector<8x32xf32> to vector<1x8x32xf32>
    tpu.vector_store %arg8[%c4, %c0_32, %c0_33], %153 {strides = array<i32>} : memref<8x8x32xf32, #tpu.memory_space<vmem>>, vector<1x8x32xf32>,
    %154 = vector.extract_strided_slice %5 {offsets = [40, 0], sizes = [8, 96], strides = [1, 1]} : vector<64x96xf32> to vector<8x96xf32>
    %155 = tpu.concatenate %150, %150 in 1 : vector<8x32xf32>, vector<8x32xf32> -> vector<8x64xf32>
    %156 = arith.mulf %155, %22 : vector<8x64xf32>
    %cst_34 = arith.constant dense<0.000000e+00> : vector<8x96xf32>
    %157 = tpu.matmul %156, %6, %cst_34 {dimension_numbers = #tpu.dot_dimension_numbers<[1], [0], [0], [1], [0, 0, 1, 1], [], []>} : vector<8x64xf32>, vector<64x96xf32>, vector<8x96xf32> -> vector<8x96xf32>
    %158 = arith.addf %157, %7 : vector<8x96xf32>
    %159 = vector.extract_strided_slice %154 {offsets = [0, 0], sizes = [8, 64], strides = [1, 1]} : vector<8x96xf32> to vector<8x64xf32>
    %160 = vector.extract_strided_slice %158 {offsets = [0, 0], sizes = [8, 64], strides = [1, 1]} : vector<8x96xf32> to vector<8x64xf32>
    %161 = arith.addf %159, %160 : vector<8x64xf32>
    %162 = arith.negf %161 : vector<8x64xf32>
    %163 = math.exp %162 : vector<8x64xf32>
    %cst_35 = arith.constant 1.000000e+00 : f32
    %164 = vector.broadcast %cst_35 : f32 to vector<8x64xf32>
    %165 = arith.addf %164, %163 : vector<8x64xf32>
    %166 = arith.divf %164, %165 : vector<8x64xf32>
    %167 = vector.extract_strided_slice %166 {offsets = [0, 0], sizes = [8, 32], strides = [1, 1]} : vector<8x64xf32> to vector<8x32xf32>
    %168 = vector.extract_strided_slice %166 {offsets = [0, 32], sizes = [8, 32], strides = [1, 1]} : vector<8x64xf32> to vector<8x32xf32>
    %169 = vector.extract_strided_slice %154 {offsets = [0, 64], sizes = [8, 32], strides = [1, 1]} : vector<8x96xf32> to vector<8x32xf32>
    %170 = vector.extract_strided_slice %158 {offsets = [0, 64], sizes = [8, 32], strides = [1, 1]} : vector<8x96xf32> to vector<8x32xf32>
    %171 = arith.mulf %167, %170 : vector<8x32xf32>
    %172 = arith.addf %169, %171 : vector<8x32xf32>
    %173 = math.tanh %172 : vector<8x32xf32>
    %174 = arith.subf %150, %173 : vector<8x32xf32>
    %175 = arith.mulf %168, %174 : vector<8x32xf32>
    %176 = arith.addf %173, %175 : vector<8x32xf32>
    %c5 = arith.constant 5 : index
    %c0_36 = arith.constant 0 : index
    %c0_37 = arith.constant 0 : index
    %177 = vector.load %arg8[%c5, %c0_36, %c0_37] : memref<8x8x32xf32, #tpu.memory_space<vmem>>, vector<1x8x32xf32>
    %178 = vector.shape_cast %177 : vector<1x8x32xf32> to vector<8x32xf32>
    %179 = vector.shape_cast %176 : vector<8x32xf32> to vector<1x8x32xf32>
    tpu.vector_store %arg8[%c5, %c0_36, %c0_37], %179 {strides = array<i32>} : memref<8x8x32xf32, #tpu.memory_space<vmem>>, vector<1x8x32xf32>,
    %180 = vector.extract_strided_slice %5 {offsets = [48, 0], sizes = [8, 96], strides = [1, 1]} : vector<64x96xf32> to vector<8x96xf32>
    %181 = tpu.concatenate %176, %176 in 1 : vector<8x32xf32>, vector<8x32xf32> -> vector<8x64xf32>
    %182 = arith.mulf %181, %22 : vector<8x64xf32>
    %cst_38 = arith.constant dense<0.000000e+00> : vector<8x96xf32>
    %183 = tpu.matmul %182, %6, %cst_38 {dimension_numbers = #tpu.dot_dimension_numbers<[1], [0], [0], [1], [0, 0, 1, 1], [], []>} : vector<8x64xf32>, vector<64x96xf32>, vector<8x96xf32> -> vector<8x96xf32>
    %184 = arith.addf %183, %7 : vector<8x96xf32>
    %185 = vector.extract_strided_slice %180 {offsets = [0, 0], sizes = [8, 64], strides = [1, 1]} : vector<8x96xf32> to vector<8x64xf32>
    %186 = vector.extract_strided_slice %184 {offsets = [0, 0], sizes = [8, 64], strides = [1, 1]} : vector<8x96xf32> to vector<8x64xf32>
    %187 = arith.addf %185, %186 : vector<8x64xf32>
    %188 = arith.negf %187 : vector<8x64xf32>
    %189 = math.exp %188 : vector<8x64xf32>
    %cst_39 = arith.constant 1.000000e+00 : f32
    %190 = vector.broadcast %cst_39 : f32 to vector<8x64xf32>
    %191 = arith.addf %190, %189 : vector<8x64xf32>
    %192 = arith.divf %190, %191 : vector<8x64xf32>
    %193 = vector.extract_strided_slice %192 {offsets = [0, 0], sizes = [8, 32], strides = [1, 1]} : vector<8x64xf32> to vector<8x32xf32>
    %194 = vector.extract_strided_slice %192 {offsets = [0, 32], sizes = [8, 32], strides = [1, 1]} : vector<8x64xf32> to vector<8x32xf32>
    %195 = vector.extract_strided_slice %180 {offsets = [0, 64], sizes = [8, 32], strides = [1, 1]} : vector<8x96xf32> to vector<8x32xf32>
    %196 = vector.extract_strided_slice %184 {offsets = [0, 64], sizes = [8, 32], strides = [1, 1]} : vector<8x96xf32> to vector<8x32xf32>
    %197 = arith.mulf %193, %196 : vector<8x32xf32>
    %198 = arith.addf %195, %197 : vector<8x32xf32>
    %199 = math.tanh %198 : vector<8x32xf32>
    %200 = arith.subf %176, %199 : vector<8x32xf32>
    %201 = arith.mulf %194, %200 : vector<8x32xf32>
    %202 = arith.addf %199, %201 : vector<8x32xf32>
    %c6 = arith.constant 6 : index
    %c0_40 = arith.constant 0 : index
    %c0_41 = arith.constant 0 : index
    %203 = vector.load %arg8[%c6, %c0_40, %c0_41] : memref<8x8x32xf32, #tpu.memory_space<vmem>>, vector<1x8x32xf32>
    %204 = vector.shape_cast %203 : vector<1x8x32xf32> to vector<8x32xf32>
    %205 = vector.shape_cast %202 : vector<8x32xf32> to vector<1x8x32xf32>
    tpu.vector_store %arg8[%c6, %c0_40, %c0_41], %205 {strides = array<i32>} : memref<8x8x32xf32, #tpu.memory_space<vmem>>, vector<1x8x32xf32>,
    %206 = vector.extract_strided_slice %5 {offsets = [56, 0], sizes = [8, 96], strides = [1, 1]} : vector<64x96xf32> to vector<8x96xf32>
    %207 = tpu.concatenate %202, %202 in 1 : vector<8x32xf32>, vector<8x32xf32> -> vector<8x64xf32>
    %208 = arith.mulf %207, %22 : vector<8x64xf32>
    %cst_42 = arith.constant dense<0.000000e+00> : vector<8x96xf32>
    %209 = tpu.matmul %208, %6, %cst_42 {dimension_numbers = #tpu.dot_dimension_numbers<[1], [0], [0], [1], [0, 0, 1, 1], [], []>} : vector<8x64xf32>, vector<64x96xf32>, vector<8x96xf32> -> vector<8x96xf32>
    %210 = arith.addf %209, %7 : vector<8x96xf32>
    %211 = vector.extract_strided_slice %206 {offsets = [0, 0], sizes = [8, 64], strides = [1, 1]} : vector<8x96xf32> to vector<8x64xf32>
    %212 = vector.extract_strided_slice %210 {offsets = [0, 0], sizes = [8, 64], strides = [1, 1]} : vector<8x96xf32> to vector<8x64xf32>
    %213 = arith.addf %211, %212 : vector<8x64xf32>
    %214 = arith.negf %213 : vector<8x64xf32>
    %215 = math.exp %214 : vector<8x64xf32>
    %cst_43 = arith.constant 1.000000e+00 : f32
    %216 = vector.broadcast %cst_43 : f32 to vector<8x64xf32>
    %217 = arith.addf %216, %215 : vector<8x64xf32>
    %218 = arith.divf %216, %217 : vector<8x64xf32>
    %219 = vector.extract_strided_slice %218 {offsets = [0, 0], sizes = [8, 32], strides = [1, 1]} : vector<8x64xf32> to vector<8x32xf32>
    %220 = vector.extract_strided_slice %218 {offsets = [0, 32], sizes = [8, 32], strides = [1, 1]} : vector<8x64xf32> to vector<8x32xf32>
    %221 = vector.extract_strided_slice %206 {offsets = [0, 64], sizes = [8, 32], strides = [1, 1]} : vector<8x96xf32> to vector<8x32xf32>
    %222 = vector.extract_strided_slice %210 {offsets = [0, 64], sizes = [8, 32], strides = [1, 1]} : vector<8x96xf32> to vector<8x32xf32>
    %223 = arith.mulf %219, %222 : vector<8x32xf32>
    %224 = arith.addf %221, %223 : vector<8x32xf32>
    %225 = math.tanh %224 : vector<8x32xf32>
    %226 = arith.subf %202, %225 : vector<8x32xf32>
    %227 = arith.mulf %220, %226 : vector<8x32xf32>
    %228 = arith.addf %225, %227 : vector<8x32xf32>
    %c7 = arith.constant 7 : index
    %c0_44 = arith.constant 0 : index
    %c0_45 = arith.constant 0 : index
    %229 = vector.load %arg8[%c7, %c0_44, %c0_45] : memref<8x8x32xf32, #tpu.memory_space<vmem>>, vector<1x8x32xf32>
    %230 = vector.shape_cast %229 : vector<1x8x32xf32> to vector<8x32xf32>
    %231 = vector.shape_cast %228 : vector<8x32xf32> to vector<1x8x32xf32>
    tpu.vector_store %arg8[%c7, %c0_44, %c0_45], %231 {strides = array<i32>} : memref<8x8x32xf32, #tpu.memory_space<vmem>>, vector<1x8x32xf32>,
    %c0_46 = arith.constant 0 : index
    %c0_47 = arith.constant 0 : index
    %232 = vector.load %arg7[%c0_46, %c0_47] : memref<8x32xf32, #tpu.memory_space<vmem>>, vector<8x32xf32>
    tpu.vector_store %arg7[%c0_46, %c0_47], %228 {strides = array<i32>} : memref<8x32xf32, #tpu.memory_space<vmem>>, vector<8x32xf32>,
    %c0_48 = arith.constant 0 : index
    %c0_49 = arith.constant 0 : index
    %c0_50 = arith.constant 0 : index
    %233 = vector.load %arg8[%c0_48, %c0_49, %c0_50] : memref<8x8x32xf32, #tpu.memory_space<vmem>>, vector<8x4x32xf32>
    %c0_51 = arith.constant 0 : index
    %c0_52 = arith.constant 0 : index
    %c0_53 = arith.constant 0 : index
    %234 = vector.load %arg6[%c0_51, %c0_52, %c0_53] : memref<8x4x64xf32, #tpu.memory_space<vmem>>, vector<8x4x32xf32>
    tpu.vector_store %arg6[%c0_51, %c0_52, %c0_53], %233 {strides = array<i32>} : memref<8x4x64xf32, #tpu.memory_space<vmem>>, vector<8x4x32xf32>,
    %c7_54 = arith.constant 7 : index
    %c4_55 = arith.constant 4 : index
    %c0_56 = arith.constant 0 : index
    %235 = vector.load %arg8[%c7_54, %c4_55, %c0_56] : memref<8x8x32xf32, #tpu.memory_space<vmem>>, vector<1x4x32xf32>
    %236 = vector.shape_cast %235 : vector<1x4x32xf32> to vector<4x32xf32>
    %c0_57 = arith.constant 0 : index
    %c0_58 = arith.constant 0 : index
    %c32 = arith.constant 32 : index
    %237 = vector.load %arg6[%c0_57, %c0_58, %c32] : memref<8x4x64xf32, #tpu.memory_space<vmem>>, vector<1x4x32xf32>
    %238 = vector.shape_cast %237 : vector<1x4x32xf32> to vector<4x32xf32>
    %239 = vector.shape_cast %236 : vector<4x32xf32> to vector<1x4x32xf32>
    tpu.vector_store %arg6[%c0_57, %c0_58, %c32], %239 {strides = array<i32>} : memref<8x4x64xf32, #tpu.memory_space<vmem>>, vector<1x4x32xf32>,
    %c6_59 = arith.constant 6 : index
    %c4_60 = arith.constant 4 : index
    %c0_61 = arith.constant 0 : index
    %240 = vector.load %arg8[%c6_59, %c4_60, %c0_61] : memref<8x8x32xf32, #tpu.memory_space<vmem>>, vector<1x4x32xf32>
    %241 = vector.shape_cast %240 : vector<1x4x32xf32> to vector<4x32xf32>
    %c1_62 = arith.constant 1 : index
    %c0_63 = arith.constant 0 : index
    %c32_64 = arith.constant 32 : index
    %242 = vector.load %arg6[%c1_62, %c0_63, %c32_64] : memref<8x4x64xf32, #tpu.memory_space<vmem>>, vector<1x4x32xf32>
    %243 = vector.shape_cast %242 : vector<1x4x32xf32> to vector<4x32xf32>
    %244 = vector.shape_cast %241 : vector<4x32xf32> to vector<1x4x32xf32>
    tpu.vector_store %arg6[%c1_62, %c0_63, %c32_64], %244 {strides = array<i32>} : memref<8x4x64xf32, #tpu.memory_space<vmem>>, vector<1x4x32xf32>,
    %c5_65 = arith.constant 5 : index
    %c4_66 = arith.constant 4 : index
    %c0_67 = arith.constant 0 : index
    %245 = vector.load %arg8[%c5_65, %c4_66, %c0_67] : memref<8x8x32xf32, #tpu.memory_space<vmem>>, vector<1x4x32xf32>
    %246 = vector.shape_cast %245 : vector<1x4x32xf32> to vector<4x32xf32>
    %c2_68 = arith.constant 2 : index
    %c0_69 = arith.constant 0 : index
    %c32_70 = arith.constant 32 : index
    %247 = vector.load %arg6[%c2_68, %c0_69, %c32_70] : memref<8x4x64xf32, #tpu.memory_space<vmem>>, vector<1x4x32xf32>
    %248 = vector.shape_cast %247 : vector<1x4x32xf32> to vector<4x32xf32>
    %249 = vector.shape_cast %246 : vector<4x32xf32> to vector<1x4x32xf32>
    tpu.vector_store %arg6[%c2_68, %c0_69, %c32_70], %249 {strides = array<i32>} : memref<8x4x64xf32, #tpu.memory_space<vmem>>, vector<1x4x32xf32>,
    %c4_71 = arith.constant 4 : index
    %c4_72 = arith.constant 4 : index
    %c0_73 = arith.constant 0 : index
    %250 = vector.load %arg8[%c4_71, %c4_72, %c0_73] : memref<8x8x32xf32, #tpu.memory_space<vmem>>, vector<1x4x32xf32>
    %251 = vector.shape_cast %250 : vector<1x4x32xf32> to vector<4x32xf32>
    %c3_74 = arith.constant 3 : index
    %c0_75 = arith.constant 0 : index
    %c32_76 = arith.constant 32 : index
    %252 = vector.load %arg6[%c3_74, %c0_75, %c32_76] : memref<8x4x64xf32, #tpu.memory_space<vmem>>, vector<1x4x32xf32>
    %253 = vector.shape_cast %252 : vector<1x4x32xf32> to vector<4x32xf32>
    %254 = vector.shape_cast %251 : vector<4x32xf32> to vector<1x4x32xf32>
    tpu.vector_store %arg6[%c3_74, %c0_75, %c32_76], %254 {strides = array<i32>} : memref<8x4x64xf32, #tpu.memory_space<vmem>>, vector<1x4x32xf32>,
    %c3_77 = arith.constant 3 : index
    %c4_78 = arith.constant 4 : index
    %c0_79 = arith.constant 0 : index
    %255 = vector.load %arg8[%c3_77, %c4_78, %c0_79] : memref<8x8x32xf32, #tpu.memory_space<vmem>>, vector<1x4x32xf32>
    %256 = vector.shape_cast %255 : vector<1x4x32xf32> to vector<4x32xf32>
    %c4_80 = arith.constant 4 : index
    %c0_81 = arith.constant 0 : index
    %c32_82 = arith.constant 32 : index
    %257 = vector.load %arg6[%c4_80, %c0_81, %c32_82] : memref<8x4x64xf32, #tpu.memory_space<vmem>>, vector<1x4x32xf32>
    %258 = vector.shape_cast %257 : vector<1x4x32xf32> to vector<4x32xf32>
    %259 = vector.shape_cast %256 : vector<4x32xf32> to vector<1x4x32xf32>
    tpu.vector_store %arg6[%c4_80, %c0_81, %c32_82], %259 {strides = array<i32>} : memref<8x4x64xf32, #tpu.memory_space<vmem>>, vector<1x4x32xf32>,
    %c2_83 = arith.constant 2 : index
    %c4_84 = arith.constant 4 : index
    %c0_85 = arith.constant 0 : index
    %260 = vector.load %arg8[%c2_83, %c4_84, %c0_85] : memref<8x8x32xf32, #tpu.memory_space<vmem>>, vector<1x4x32xf32>
    %261 = vector.shape_cast %260 : vector<1x4x32xf32> to vector<4x32xf32>
    %c5_86 = arith.constant 5 : index
    %c0_87 = arith.constant 0 : index
    %c32_88 = arith.constant 32 : index
    %262 = vector.load %arg6[%c5_86, %c0_87, %c32_88] : memref<8x4x64xf32, #tpu.memory_space<vmem>>, vector<1x4x32xf32>
    %263 = vector.shape_cast %262 : vector<1x4x32xf32> to vector<4x32xf32>
    %264 = vector.shape_cast %261 : vector<4x32xf32> to vector<1x4x32xf32>
    tpu.vector_store %arg6[%c5_86, %c0_87, %c32_88], %264 {strides = array<i32>} : memref<8x4x64xf32, #tpu.memory_space<vmem>>, vector<1x4x32xf32>,
    %c1_89 = arith.constant 1 : index
    %c4_90 = arith.constant 4 : index
    %c0_91 = arith.constant 0 : index
    %265 = vector.load %arg8[%c1_89, %c4_90, %c0_91] : memref<8x8x32xf32, #tpu.memory_space<vmem>>, vector<1x4x32xf32>
    %266 = vector.shape_cast %265 : vector<1x4x32xf32> to vector<4x32xf32>
    %c6_92 = arith.constant 6 : index
    %c0_93 = arith.constant 0 : index
    %c32_94 = arith.constant 32 : index
    %267 = vector.load %arg6[%c6_92, %c0_93, %c32_94] : memref<8x4x64xf32, #tpu.memory_space<vmem>>, vector<1x4x32xf32>
    %268 = vector.shape_cast %267 : vector<1x4x32xf32> to vector<4x32xf32>
    %269 = vector.shape_cast %266 : vector<4x32xf32> to vector<1x4x32xf32>
    tpu.vector_store %arg6[%c6_92, %c0_93, %c32_94], %269 {strides = array<i32>} : memref<8x4x64xf32, #tpu.memory_space<vmem>>, vector<1x4x32xf32>,
    %c0_95 = arith.constant 0 : index
    %c4_96 = arith.constant 4 : index
    %c0_97 = arith.constant 0 : index
    %270 = vector.load %arg8[%c0_95, %c4_96, %c0_97] : memref<8x8x32xf32, #tpu.memory_space<vmem>>, vector<1x4x32xf32>
    %271 = vector.shape_cast %270 : vector<1x4x32xf32> to vector<4x32xf32>
    %c7_98 = arith.constant 7 : index
    %c0_99 = arith.constant 0 : index
    %c32_100 = arith.constant 32 : index
    %272 = vector.load %arg6[%c7_98, %c0_99, %c32_100] : memref<8x4x64xf32, #tpu.memory_space<vmem>>, vector<1x4x32xf32>
    %273 = vector.shape_cast %272 : vector<1x4x32xf32> to vector<4x32xf32>
    %274 = vector.shape_cast %271 : vector<4x32xf32> to vector<1x4x32xf32>
    tpu.vector_store %arg6[%c7_98, %c0_99, %c32_100], %274 {strides = array<i32>} : memref<8x4x64xf32, #tpu.memory_space<vmem>>, vector<1x4x32xf32>,
    return
  }
}

</mosaic_0001>

<bundles_post_ra>
// kernel: sent_model_forward.1
= control target key start
LH: loop header
LB: loop body
LE: loop exit
PB: predicated region body
PF: predicated region fallthrough
CT: control target
= control target key end

     0   :  { %13 = vsyncpa [#allocation4], 0  ;;  %s1720_s30 = smov 32   ;;  %v1721_v4 = vmov 0.0|0.0   ;;  %vm1722_vm0 = vmmov 0   ;;  %v1723_v12 = vmov 0.0   ;;  %s2127_s0 = inlined_call_operand.vmem [shape: f32[64,64], index: 0, kind: input, shape index: {}]   ;;  %s2128_s1 = inlined_call_operand.vmem [shape: f32[8,32], index: 1, kind: input, shape index: {}]   ;;  %s2129_s2 = inlined_call_operand.vmem [shape: f32[64,96], index: 2, kind: input, shape index: {}]   ;;  %s2130_s3 = inlined_call_operand.vmem [shape: f32[64,96], index: 3, kind: input, shape index: {}]   ;;  %s2131_s4 = inlined_call_operand.vmem [shape: f32[8,96], index: 4, kind: input, shape index: {}]   ;;  %s2132_s5 = inlined_call_operand.vmem [shape: f32[8,96], index: 5, kind: input, shape index: {}]   ;;  %s2133_s6 = inlined_call_operand.hbm [shape: f32[8,4,64], index: 6, kind: output, shape index: {0}]   ;;  %s2134_s7 = inlined_call_operand.hbm [shape: f32[8,32], index: 7, kind: output, shape index: {1}]  }
   0x1   :  { %v1772_v0 = vld [vmem:[%s2128_s1] sm:$0xff]  ;;  %v36_v2 = vld [vmem:[%s2129_s2 + $0x8] sm:$0xff]  ;;  %1519 = vmatprep.subr.bf16.mxu1 %v1721_v4  ;;  %v37_v7 = vld [vmem:[%s2129_s2 + $0x10] sm:$0xff]  ;;  %1367 = vmatprep.mubr.msk.f32.mxu1 %vm1722_vm0, %v1723_v12  ;;  %vm44_vm1 = vcmask 523264  }
   0x2   :  { %v35_v1 = vld [vmem:[%s2129_s2] sm:$0xff]  ;;  %198 = vrot.lane.b32.xlu0 %v1772_v0, %s1720_s30  ;;  %v175_v6 = vld [vmem:[%s2130_s3 + $0x8] sm:$0xff]  ;;  %v38_v9 = vld [vmem:[%s2129_s2 + $0x18] sm:$0xff] }
   0x3   :  { %v1503_v3 = vpack.c.bf16 %v36_v2, %v35_v1  ;;  %v174_v5 = vld [vmem:[%s2130_s3] sm:$0xff]  ;;  %v176_v10 = vld [vmem:[%s2130_s3 + $0x10] sm:$0xff]  ;;  %v177_v11 = vld [vmem:[%s2130_s3 + $0x18] sm:$0xff]  ;;  %v1507_v13 = vpack.c.bf16 %v38_v9, %v37_v7 }
   0x4   :  { %v1792_v8 = vpack.c.bf16 %v175_v6, %v174_v5  ;;  %v39_v14 = vld [vmem:[%s2129_s2 + $0x20] sm:$0xff]  ;;  %v40_v15 = vld [vmem:[%s2129_s2 + $0x28] sm:$0xff]  ;;  %v1812_v16 = vpack.c.bf16 %v177_v11, %v176_v10  ;;  %v41_v20 = vld [vmem:[%s2129_s2 + $0x30] sm:$0xff] }
   0x5   :  { %1504 = vmatprep.subr.bf16.mxu0 %v1503_v3  ;;  %v1511_v17 = vpack.c.bf16 %v40_v15, %v39_v14  ;;  %v178_v18 = vld [vmem:[%s2130_s3 + $0x20] sm:$0xff]  ;;  %v179_v19 = vld [vmem:[%s2130_s3 + $0x28] sm:$0xff]  ;;  %v42_v21 = vld [vmem:[%s2129_s2 + $0x38] sm:$0xff] }
   0x6   :  { %1506 = vmatpush3.bf16.msra.mxu0 %v1503_v3  ;;  %1521 = vmatpush3.bf16.msra.mxu1 %v1792_v8  ;;  %v27_v22 = vld [vmem:[%s2127_s0] sm:$0xff]  ;;  %v1832_v23 = vpack.c.bf16 %v179_v19, %v178_v18 }
   0x7   :  { %1508 = vmatprep.subr.bf16.mxu0 %v1507_v13  ;;  %1522 = vmatprep.subr.bf16.mxu1 %v1721_v4 }
   0x8   :  { %1339 = vmatprep.mubr.msk.f32.mxu0 %vm44_vm1, %v27_v22 }
   0xa   :  { %1510 = vmatpush3.bf16.msra.mxu0 %v1507_v13  ;;  %1524 = vmatpush3.bf16.msra.mxu1 %v1812_v16 }
   0xb   :  { %14 = vsyncpa [#allocation6], 0  ;;  %1512 = vmatprep.subr.bf16.mxu0 %v1511_v17  ;;  %1525 = vmatprep.subr.bf16.mxu1 %v1721_v4  ;;  %v1515_v24 = vpack.c.bf16 %v42_v21, %v41_v20  ;;  %v180_v25 = vld [vmem:[%s2130_s3 + $0x30] sm:$0xff]  ;;  %v181_v26 = vld [vmem:[%s2130_s3 + $0x38] sm:$0xff]  ;;  %v183_v29 = vlaneseq  ;;  %vm201_vm9 = vcmask 261120   ;;  %s1724_s16 = smov 64  }
   0xc   :  { %v1842_v27 = vpack.c.bf16 %v181_v26, %v180_v25  ;;  %v28_v28 = vld [vmem:[%s2127_s0 + $0x8] sm:$0xff]  ;;  %v1882_v38 = vld [vmem:[%s2132_s5] sm:$0xff]  ;;  %v29_v56 = vld [vmem:[%s2127_s0 + $0x10] sm:$0xff]  ;;  %s1725_s29 = smov 96   ;;  %vm1115_vm10 = vcmask 257024   ;;  %vm1129_vm11 = vcmask 519424  }
   0xd   :  { %v184_v30 = vshrl.u32 %v183_v29, 7  ;;  %v186_v31 = vand.u32 127, %v183_v29  ;;  %v1889_v42 = vld [vmem:[%s2131_s4] sm:$0xff]  ;;  %v30_v57 = vld [vmem:[%s2127_s0 + $0x18] sm:$0xff]  ;;  %v32_v59 = vld [vmem:[%s2127_s0 + $0x28] sm:$0xff] }
   0xe   :  { %1514 = vmatpush3.bf16.msra.mxu0 %v1511_v17  ;;  %1527 = vmatpush3.bf16.msra.mxu1 %v1832_v23  ;;  %v31_v58 = vld [vmem:[%s2127_s0 + $0x20] sm:$0xff]  ;;  %v33_v60 = vld [vmem:[%s2127_s0 + $0x30] sm:$0xff]  ;;  %v34_v61 = vld [vmem:[%s2127_s0 + $0x38] sm:$0xff]  ;;  %s1726_s0 = smov [#allocation5]  }
   0xf   :  { %1516 = vmatprep.subr.bf16.mxu0 %v1515_v24  ;;  %1528 = vmatprep.subr.bf16.mxu1 %v1721_v4  ;;  %vm187_vm2 = vcmp.lt.s32.totalorder %v184_v30, 4  ;;  %vm188_vm3 = vcmp.lt.s32.totalorder %v186_v31, 32  ;;  %vm190_vm4 = vcmp.ge.s32.totalorder %v184_v30, 4  ;;  %vm191_vm5 = vcmp.ge.s32.totalorder %v186_v31, 32  ;;  %s1198_s8 = sshll.u32 %s1726_s0, 4  ;;  %s1199_s8 = int_to_ptr.vmem [resolvable:$true] %s1198_s8 }
  0x10   :  { %vm189_vm6 = vmand %vm187_vm2, %vm188_vm3  ;;  %s1672_s9 = scalar_lea.vmem %s1199_s8, 128  ;;  %p1677_p1 = scmp.lt.s32.totalorder %s1199_s8, %s1199_s8 }
  0x11   :  { %vm192_vm7 = vmand %vm190_vm4, %vm191_vm5  ;;  %p1673_p0 = scmp.ne.s32.totalorder %s1199_s8, %s1672_s9  ;;  %p1678_p2 = scmp.lt.s32.totalorder %s1672_s9, %s1672_s9 }
  0x12   :  { %1518 = vmatpush3.bf16.msra.mxu0 %v1515_v24  ;;  %1530 = vmatpush3.bf16.msra.mxu1 %v1842_v27  ;;  %vm193_vm8 = vmor %vm189_vm6, %vm192_vm7 }
  0x13   :  { %1531 = vmatprep.subr.bf16.mxu0 %v1721_v4  ;;  %1543 = vmatprep.subr.bf16.mxu1 %v1721_v4  ;;  %v1861_v32 = vsel %vm193_vm8, 1.0, %v1723_v12  ;;  %p1679_p3 = por %p1678_p2, %p1677_p1 }
  0x15   :  { %1340 = vmatmul.mubr.msk.f32.vlgmr.msra.gmra.mrb[0].mxu0 %vm44_vm1, %v28_v28  ;;  %p1680_p4 = pnand %p1679_p3, %p1673_p0 }
  0x16   :  { %1533 = vmatpush3.bf16.msra.mxu0 %v1792_v8  ;;  %1342 = vmatprep.mubr.msk.f32.mxu0 %vm44_vm1, %v29_v56 }
  0x17   :  { %1534 = vmatprep.subr.bf16.mxu0 %v1721_v4 }
  0x19   :  { %1343 = vmatmul.mubr.msk.f32.gmra.mrb[2].mxu0 %vm44_vm1, %v30_v57 }
  0x1a   :  { %1536 = vmatpush3.bf16.msra.mxu0 %v1812_v16  ;;  %1345 = vmatprep.mubr.msk.f32.mxu0 %vm44_vm1, %v31_v58 }
  0x1b   :  { %1537 = vmatprep.subr.bf16.mxu0 %v1721_v4 }
  0x1d   :  { %1346 = vmatmul.mubr.msk.f32.gmra.mrb[4].mxu0 %vm44_vm1, %v32_v59 }
  0x1e   :  { %1539 = vmatpush3.bf16.msra.mxu0 %v1832_v23  ;;  %1348 = vmatprep.mubr.msk.f32.mxu0 %vm44_vm1, %v33_v60 }
  0x1f   :  { %1540 = vmatprep.subr.bf16.mxu0 %v1721_v4 }
  0x21   :  { %1349 = vmatmul.mubr.msk.f32.gmra.mrb[6].mxu0 %vm44_vm1, %v34_v61 }
  0x22   :  { %1542 = vmatpush3.bf16.msra.mxu0 %v1842_v27  ;;  %1386 = vmatprep.mubr.msk.f32.mxu0 %vm1722_vm0, %v1723_v12 }
  0x23   :  { %1555 = vmatprep.subr.bf16.mxu0 %v1721_v4 }
  0x74   :  { %v199_v33 = vpop.permute.xlu0 %198 }
  0x75   :  { %v202_v34 = vsel %vm201_vm9, %v1772_v0, %v199_v33 }
  0x76   :  { %v203_v35 = vmul.f32 %v1861_v32, %v202_v34 }
  0x78   :  { %1368 = vmatmul.mubr.msk.f32.vlgmr.msra.gmra.mrb[0].mxu1 %vm44_vm1, %v203_v35 }
  0x79   :  { %1545 = vmatpush3.bf16.msra.mxu1 %v1792_v8  ;;  %1405 = vmatprep.mubr.msk.f32.mxu1 %vm1722_vm0, %v1723_v12 }
  0x7a   :  { %1546 = vmatprep.subr.bf16.mxu1 %v1721_v4 }
  0x7d   :  { %1548 = vmatpush3.bf16.msra.mxu1 %v1812_v16 }
  0x7e   :  { %1549 = vmatprep.subr.bf16.mxu1 %v1721_v4 }
  0x81   :  { %1551 = vmatpush3.bf16.msra.mxu1 %v1832_v23 }
  0x82   :  { %1552 = vmatprep.subr.bf16.mxu1 %v1721_v4 }
  0x85   :  { %1554 = vmatpush3.bf16.msra.mxu1 %v1842_v27 }
  0x86   :  { %1567 = vmatprep.subr.bf16.mxu1 %v1721_v4 }
  0xe8   :  { %v1877_v36 = vpop.f32.mrb[0].mxu0 }
  0xe9   :  { %v135_v37 = vpop.f32.mrb[1].mxu0  ;;  %v141_v20 = vadd.f32 %v1877_v36, %v1889_v42 }
  0xea   :  { %v136_v43 = vadd.f32 %v135_v37, %v1889_v42 }
  0xec   :  { %v1925_v2 = vpop.f32.mrb[2].mxu0 }
  0xed   :  { %v1927_v3 = vpop.f32.mrb[3].mxu0 }
  0xf0   :  { %v1929_v5 = vpop.f32.mrb[4].mxu0 }
  0xf1   :  { %v1931_v6 = vpop.f32.mrb[5].mxu0 }
  0xf4   :  { %v1933_v7 = vpop.f32.mrb[6].mxu0 }
  0xf5   :  { %v1935_v9 = vpop.f32.mrb[7].mxu0 }
 0x14b   :  { %v273_v39 = vpop.f32.mrb[0].mxu1 }
 0x14c   :  { %v274_v40 = vadd.f32 %v273_v39, %v1882_v38  ;;  %v1369_v41 = vpop.f32.mrb[1].mxu1 }
 0x14e   :  { %285 = vrot.lane.b32.xlu0 %v274_v40, %s1724_s16  ;;  %v277_v44 = vadd.f32 %v274_v40, %v136_v43 }
 0x150   :  { %v1220_v45 = vmul.f32 -1.442695, %v277_v44 }
 0x152   :  { %1624 = vpow2.f32 %v1220_v45 }
 0x15c   :  { %v1625_v46 = vpop.eup %1624 }
 0x15d   :  { %v281_v47 = vadd.f32 1.0, %v1625_v46 }
 0x15f   :  { %1626 = vrcp.f32 %v281_v47 }
 0x169   :  { %v1627_v48 = vpop.eup %1626 }
 0x1c0   :  { %v286_v49 = vpop.permute.xlu0 %285 }
 0x1c1   :  { %v288_v50 = vmul.f32 %v1627_v48, %v286_v49  ;;  %v146_v49 = vadd.f32 %v1927_v3, %v1889_v42 }
 0x1c3   :  { %290 = vrot.lane.b32.xlu1 %v288_v50, %s1724_s16 }
 0x235   :  { %v291_v51 = vpop.permute.xlu1 %290 }
 0x236   :  { %v293_v52 = vadd.f32 %v291_v51, %v136_v43 }
 0x238   :  { %1628 = vtanh.f32 %v293_v52 }
 0x242   :  { %v1629_v53 = vpop.eup %1628 }
 0x243   :  { %296 = vrot.lane.b32.xlu1 %v1629_v53, %s1724_s16 }
 0x2b5   :  { %v297_v54 = vpop.permute.xlu1 %296 }
 0x2b6   :  { %v299_v55 = vsub.f32 %v1772_v0, %v297_v54 }
 0x2b8   :  { %301 = vrot.lane.b32.xlu0 %v299_v55, %s1720_s30 }
 0x32a   :  { %v302_v62 = vpop.permute.xlu0 %301 }
 0x32b   :  { %v304_v63 = vmul.f32 %v1627_v48, %v302_v62 }
 0x32d   :  { %306 = vrot.lane.b32.xlu1 %v304_v63, %s1720_s30 }
 0x39f   :  { %v307_v0 = vpop.permute.xlu1 %306 }
 0x3a0   :  { %v309_v1 = vadd.f32 %v1629_v53, %v307_v0 }
 0x3a2   :  { %315 = vrot.lane.b32.xlu1 %v309_v1, %s1725_s29  ;;  %311 = vrot.lane.b32.xlu0 %v309_v1, %s1724_s16 }
 0x414   :  { %v316_v10 = vpop.permute.xlu1 %315  ;;  %v312_v11 = vpop.permute.xlu0 %311 }
 0x415   :  { %314 = vst.msk [vmem:[#allocation2] sm:$0xff] %vm201_vm9, %v312_v11  ;;  %v318_v13 = vsel %vm201_vm9, %v312_v11, %v316_v10 }
 0x416   :  { %v319_v14 = vmul.f32 %v1861_v32, %v318_v13 }
 0x418   :  { %1387 = vmatmul.mubr.msk.f32.vlgmr.msra.gmra.mrb[8].mxu0 %vm44_vm1, %v319_v14 }
 0x419   :  { %1557 = vmatpush3.bf16.msra.mxu0 %v1792_v8  ;;  %1424 = vmatprep.mubr.msk.f32.mxu0 %vm1722_vm0, %v1723_v12 }
 0x41a   :  { %1558 = vmatprep.subr.bf16.mxu0 %v1721_v4 }
 0x41c   :  { %v1107_v15 = vld [vmem:[#allocation2] sm:$0xf] }
 0x41d   :  { %1560 = vmatpush3.bf16.msra.mxu0 %v1812_v16  ;;  %1116 = vst.msk [vmem:[#allocation3] sm:$0xf] %vm1115_vm10, %v1107_v15 }
 0x41e   :  { %1561 = vmatprep.subr.bf16.mxu0 %v1721_v4 }
 0x421   :  { %1563 = vmatpush3.bf16.msra.mxu0 %v1832_v23 }
 0x422   :  { %1564 = vmatprep.subr.bf16.mxu0 %v1721_v4 }
 0x425   :  { %1566 = vmatpush3.bf16.msra.mxu0 %v1842_v27 }
 0x426   :  { %1579 = vmatprep.subr.bf16.mxu0 %v1721_v4 }
 0x4eb   :  { %v389_v17 = vpop.f32.mrb[8].mxu0 }
 0x4ec   :  { %v390_v18 = vadd.f32 %v389_v17, %v1882_v38  ;;  %v1388_v19 = vpop.f32.mrb[9].mxu0 }
 0x4ee   :  { %401 = vrot.lane.b32.xlu0 %v390_v18, %s1724_s16  ;;  %v393_v21 = vadd.f32 %v390_v18, %v141_v20  ;;  %v151_v18 = vadd.f32 %v1925_v2, %v1889_v42 }
 0x4f0   :  { %v1222_v22 = vmul.f32 -1.442695, %v393_v21 }
 0x4f2   :  { %1630 = vpow2.f32 %v1222_v22 }
 0x4fc   :  { %v1631_v24 = vpop.eup %1630 }
 0x4fd   :  { %v397_v25 = vadd.f32 1.0, %v1631_v24 }
 0x4ff   :  { %1632 = vrcp.f32 %v397_v25 }
 0x509   :  { %v1633_v26 = vpop.eup %1632 }
 0x560   :  { %v402_v28 = vpop.permute.xlu0 %401 }
 0x561   :  { %v404_v29 = vmul.f32 %v1633_v26, %v402_v28 }
 0x563   :  { %406 = vrot.lane.b32.xlu1 %v404_v29, %s1724_s16 }
 0x5d5   :  { %v407_v30 = vpop.permute.xlu1 %406 }
 0x5d6   :  { %v409_v31 = vadd.f32 %v407_v30, %v141_v20 }
 0x5d8   :  { %1634 = vtanh.f32 %v409_v31 }
 0x5e2   :  { %v1635_v33 = vpop.eup %1634 }
 0x5e3   :  { %v411_v34 = vsub.f32 %v309_v1, %v1635_v33 }
 0x5e5   :  { %413 = vrot.lane.b32.xlu0 %v411_v34, %s1725_s29 }
 0x657   :  { %v414_v35 = vpop.permute.xlu0 %413 }
 0x658   :  { %v416_v36 = vmul.f32 %v1633_v26, %v414_v35 }
 0x65a   :  { %418 = vrot.lane.b32.xlu1 %v416_v36, %s1720_s30 }
 0x6cc   :  { %v419_v37 = vpop.permute.xlu1 %418 }
 0x6cd   :  { %v421_v39 = vadd.f32 %v1635_v33, %v419_v37 }
 0x6cf   :  { %428 = vrot.lane.b32.xlu1 %v421_v39, %s1725_s29  ;;  %423 = vrot.lane.b32.xlu0 %v421_v39, %s1724_s16 }
 0x741   :  { %v429_v40 = vpop.permute.xlu1 %428  ;;  %v424_v41 = vpop.permute.xlu0 %423 }
 0x742   :  { %427 = vst.msk [vmem:[#allocation2 + $0x8] sm:$0xff] %vm201_vm9, %v424_v41  ;;  %v431_v43 = vsel %vm201_vm9, %v424_v41, %v429_v40 }
 0x743   :  { %v432_v44 = vmul.f32 %v1861_v32, %v431_v43 }
 0x745   :  { %1406 = vmatmul.mubr.msk.f32.vlgmr.msra.gmra.mrb[2].mxu1 %vm44_vm1, %v432_v44 }
 0x746   :  { %1569 = vmatpush3.bf16.msra.mxu1 %v1792_v8  ;;  %1443 = vmatprep.mubr.msk.f32.mxu1 %vm1722_vm0, %v1723_v12 }
 0x747   :  { %1570 = vmatprep.subr.bf16.mxu1 %v1721_v4 }
 0x749   :  { %v1108_v45 = vld [vmem:[#allocation2 + $0x8] sm:$0xf] }
 0x74a   :  { %1572 = vmatpush3.bf16.msra.mxu1 %v1812_v16  ;;  %1117 = vst.msk [vmem:[#allocation3 + $0x4] sm:$0xf] %vm1115_vm10, %v1108_v45 }
 0x74b   :  { %1573 = vmatprep.subr.bf16.mxu1 %v1721_v4 }
 0x74e   :  { %1575 = vmatpush3.bf16.msra.mxu1 %v1832_v23 }
 0x74f   :  { %1576 = vmatprep.subr.bf16.mxu1 %v1721_v4 }
 0x752   :  { %1578 = vmatpush3.bf16.msra.mxu1 %v1842_v27 }
 0x753   :  { %1591 = vmatprep.subr.bf16.mxu1 %v1721_v4 }
 0x818   :  { %v502_v46 = vpop.f32.mrb[2].mxu1 }
 0x819   :  { %v503_v47 = vadd.f32 %v502_v46, %v1882_v38  ;;  %v1407_v48 = vpop.f32.mrb[3].mxu1  ;;  %v156_v46 = vadd.f32 %v1931_v6, %v1889_v42 }
 0x81b   :  { %514 = vrot.lane.b32.xlu0 %v503_v47, %s1724_s16  ;;  %v506_v50 = vadd.f32 %v503_v47, %v146_v49 }
 0x81d   :  { %v1224_v51 = vmul.f32 -1.442695, %v506_v50 }
 0x81f   :  { %1636 = vpow2.f32 %v1224_v51 }
 0x829   :  { %v1637_v52 = vpop.eup %1636 }
 0x82a   :  { %v510_v53 = vadd.f32 1.0, %v1637_v52 }
 0x82c   :  { %1638 = vrcp.f32 %v510_v53 }
 0x836   :  { %v1639_v54 = vpop.eup %1638 }
 0x88d   :  { %v515_v55 = vpop.permute.xlu0 %514 }
 0x88e   :  { %v517_v56 = vmul.f32 %v1639_v54, %v515_v55 }
 0x890   :  { %519 = vrot.lane.b32.xlu1 %v517_v56, %s1724_s16 }
 0x902   :  { %v520_v57 = vpop.permute.xlu1 %519 }
 0x903   :  { %v522_v58 = vadd.f32 %v520_v57, %v146_v49 }
 0x905   :  { %1640 = vtanh.f32 %v522_v58 }
 0x90f   :  { %v1641_v59 = vpop.eup %1640 }
 0x910   :  { %v524_v60 = vsub.f32 %v421_v39, %v1641_v59 }
 0x912   :  { %526 = vrot.lane.b32.xlu0 %v524_v60, %s1725_s29 }
 0x984   :  { %v527_v61 = vpop.permute.xlu0 %526 }
 0x985   :  { %v529_v62 = vmul.f32 %v1639_v54, %v527_v61 }
 0x987   :  { %531 = vrot.lane.b32.xlu1 %v529_v62, %s1720_s30 }
 0x9f9   :  { %v532_v63 = vpop.permute.xlu1 %531 }
 0x9fa   :  { %v534_v0 = vadd.f32 %v1641_v59, %v532_v63 }
 0x9fc   :  { %541 = vrot.lane.b32.xlu1 %v534_v0, %s1725_s29  ;;  %536 = vrot.lane.b32.xlu0 %v534_v0, %s1724_s16 }
 0xa6e   :  { %v542_v1 = vpop.permute.xlu1 %541  ;;  %v537_v3 = vpop.permute.xlu0 %536 }
 0xa6f   :  { %540 = vst.msk [vmem:[#allocation2 + $0x10] sm:$0xff] %vm201_vm9, %v537_v3  ;;  %v544_v10 = vsel %vm201_vm9, %v537_v3, %v542_v1 }
 0xa70   :  { %v545_v11 = vmul.f32 %v1861_v32, %v544_v10 }
 0xa72   :  { %1425 = vmatmul.mubr.msk.f32.vlgmr.msra.gmra.mrb[10].mxu0 %vm44_vm1, %v545_v11 }
 0xa73   :  { %1581 = vmatpush3.bf16.msra.mxu0 %v1792_v8  ;;  %1462 = vmatprep.mubr.msk.f32.mxu0 %vm1722_vm0, %v1723_v12 }
 0xa74   :  { %1582 = vmatprep.subr.bf16.mxu0 %v1721_v4 }
 0xa76   :  { %v1109_v13 = vld [vmem:[#allocation2 + $0x10] sm:$0xf] }
 0xa77   :  { %1584 = vmatpush3.bf16.msra.mxu0 %v1812_v16  ;;  %1118 = vst.msk [vmem:[#allocation3 + $0x8] sm:$0xf] %vm1115_vm10, %v1109_v13 }
 0xa78   :  { %1585 = vmatprep.subr.bf16.mxu0 %v1721_v4 }
 0xa7b   :  { %1587 = vmatpush3.bf16.msra.mxu0 %v1832_v23 }
 0xa7c   :  { %1588 = vmatprep.subr.bf16.mxu0 %v1721_v4 }
 0xa7f   :  { %1590 = vmatpush3.bf16.msra.mxu0 %v1842_v27 }
 0xa80   :  { %1603 = vmatprep.subr.bf16.mxu0 %v1721_v4 }
 0xb45   :  { %v615_v14 = vpop.f32.mrb[10].mxu0 }
 0xb46   :  { %v616_v15 = vadd.f32 %v615_v14, %v1882_v38  ;;  %v1426_v17 = vpop.f32.mrb[11].mxu0 }
 0xb48   :  { %627 = vrot.lane.b32.xlu0 %v616_v15, %s1724_s16  ;;  %v619_v19 = vadd.f32 %v616_v15, %v151_v18 }
 0xb4a   :  { %v1226_v20 = vmul.f32 -1.442695, %v619_v19 }
 0xb4c   :  { %1642 = vpow2.f32 %v1226_v20 }
 0xb56   :  { %v1643_v21 = vpop.eup %1642 }
 0xb57   :  { %v623_v22 = vadd.f32 1.0, %v1643_v21 }
 0xb59   :  { %1644 = vrcp.f32 %v623_v22 }
 0xb63   :  { %v1645_v24 = vpop.eup %1644 }
 0xbba   :  { %v628_v25 = vpop.permute.xlu0 %627 }
 0xbbb   :  { %v630_v26 = vmul.f32 %v1645_v24, %v628_v25 }
 0xbbd   :  { %632 = vrot.lane.b32.xlu1 %v630_v26, %s1724_s16 }
 0xc2f   :  { %v633_v28 = vpop.permute.xlu1 %632 }
 0xc30   :  { %v635_v29 = vadd.f32 %v633_v28, %v151_v18 }
 0xc32   :  { %1646 = vtanh.f32 %v635_v29 }
 0xc3c   :  { %v1647_v30 = vpop.eup %1646 }
 0xc3d   :  { %v637_v31 = vsub.f32 %v534_v0, %v1647_v30 }
 0xc3f   :  { %639 = vrot.lane.b32.xlu0 %v637_v31, %s1725_s29 }
 0xcb1   :  { %v640_v33 = vpop.permute.xlu0 %639 }
 0xcb2   :  { %v642_v2 = vmul.f32 %v1645_v24, %v640_v33 }
 0xcb4   :  { %644 = vrot.lane.b32.xlu1 %v642_v2, %s1720_s30  ;;  %v166_v2 = vadd.f32 %v1935_v9, %v1889_v42 }
 0xd26   :  { %v645_v34 = vpop.permute.xlu1 %644 }
 0xd27   :  { %v647_v35 = vadd.f32 %v1647_v30, %v645_v34 }
 0xd29   :  { %654 = vrot.lane.b32.xlu1 %v647_v35, %s1725_s29  ;;  %649 = vrot.lane.b32.xlu0 %v647_v35, %s1724_s16 }
 0xd9b   :  { %v655_v36 = vpop.permute.xlu1 %654  ;;  %v650_v37 = vpop.permute.xlu0 %649 }
 0xd9c   :  { %653 = vst.msk [vmem:[#allocation2 + $0x18] sm:$0xff] %vm201_vm9, %v650_v37  ;;  %v657_v39 = vsel %vm201_vm9, %v650_v37, %v655_v36 }
 0xd9d   :  { %v658_v40 = vmul.f32 %v1861_v32, %v657_v39 }
 0xd9f   :  { %1444 = vmatmul.mubr.msk.f32.vlgmr.msra.gmra.mrb[4].mxu1 %vm44_vm1, %v658_v40 }
 0xda0   :  { %1593 = vmatpush3.bf16.msra.mxu1 %v1792_v8  ;;  %1481 = vmatprep.mubr.msk.f32.mxu1 %vm1722_vm0, %v1723_v12 }
 0xda1   :  { %1594 = vmatprep.subr.bf16.mxu1 %v1721_v4 }
 0xda3   :  { %v1110_v41 = vld [vmem:[#allocation2 + $0x18] sm:$0xf] }
 0xda4   :  { %1596 = vmatpush3.bf16.msra.mxu1 %v1812_v16  ;;  %1119 = vst.msk [vmem:[#allocation3 + $0xc] sm:$0xf] %vm1115_vm10, %v1110_v41 }
 0xda5   :  { %1597 = vmatprep.subr.bf16.mxu1 %v1721_v4 }
 0xda8   :  { %1599 = vmatpush3.bf16.msra.mxu1 %v1832_v23 }
 0xda9   :  { %1600 = vmatprep.subr.bf16.mxu1 %v1721_v4 }
 0xdac   :  { %1602 = vmatpush3.bf16.msra.mxu1 %v1842_v27 }
 0xe72   :  { %v728_v43 = vpop.f32.mrb[4].mxu1 }
 0xe73   :  { %v729_v44 = vadd.f32 %v728_v43, %v1882_v38  ;;  %v1445_v45 = vpop.f32.mrb[5].mxu1 }
 0xe75   :  { %740 = vrot.lane.b32.xlu0 %v729_v44, %s1724_s16  ;;  %v732_v47 = vadd.f32 %v729_v44, %v156_v46 }
 0xe77   :  { %v1228_v48 = vmul.f32 -1.442695, %v732_v47 }
 0xe79   :  { %1648 = vpow2.f32 %v1228_v48 }
 0xe83   :  { %v1649_v49 = vpop.eup %1648 }
 0xe84   :  { %v736_v50 = vadd.f32 1.0, %v1649_v49 }
 0xe86   :  { %1650 = vrcp.f32 %v736_v50 }
 0xe90   :  { %v1651_v51 = vpop.eup %1650 }
 0xee7   :  { %v741_v52 = vpop.permute.xlu0 %740 }
 0xee8   :  { %v743_v53 = vmul.f32 %v1651_v51, %v741_v52 }
 0xeea   :  { %745 = vrot.lane.b32.xlu1 %v743_v53, %s1724_s16 }
 0xf5c   :  { %v746_v54 = vpop.permute.xlu1 %745 }
 0xf5d   :  { %v748_v55 = vadd.f32 %v746_v54, %v156_v46 }
 0xf5f   :  { %1652 = vtanh.f32 %v748_v55 }
 0xf69   :  { %v1653_v56 = vpop.eup %1652 }
 0xf6a   :  { %v750_v57 = vsub.f32 %v647_v35, %v1653_v56 }
 0xf6c   :  { %752 = vrot.lane.b32.xlu0 %v750_v57, %s1725_s29 }
 0xfde   :  { %v753_v58 = vpop.permute.xlu0 %752 }
 0xfdf   :  { %v755_v6 = vmul.f32 %v1651_v51, %v753_v58  ;;  %v171_v58 = vadd.f32 %v1933_v7, %v1889_v42 }
 0xfe1   :  { %757 = vrot.lane.b32.xlu1 %v755_v6, %s1720_s30 }
0x1053   :  { %v758_v59 = vpop.permute.xlu1 %757 }
0x1054   :  { %v760_v60 = vadd.f32 %v1653_v56, %v758_v59 }
0x1056   :  { %767 = vrot.lane.b32.xlu1 %v760_v60, %s1725_s29  ;;  %762 = vrot.lane.b32.xlu0 %v760_v60, %s1724_s16 }
0x10c8   :  { %v768_v61 = vpop.permute.xlu1 %767  ;;  %v763_v62 = vpop.permute.xlu0 %762 }
0x10c9   :  { %766 = vst.msk [vmem:[#allocation2 + $0x20] sm:$0xff] %vm201_vm9, %v763_v62  ;;  %v770_v63 = vsel %vm201_vm9, %v763_v62, %v768_v61 }
0x10ca   :  { %v771_v0 = vmul.f32 %v1861_v32, %v770_v63 }
0x10cc   :  { %1463 = vmatmul.mubr.msk.f32.vlgmr.msra.gmra.mrb[12].mxu0 %vm44_vm1, %v771_v0 }
0x10cd   :  { %1605 = vmatpush3.bf16.msra.mxu0 %v1792_v8  ;;  %1500 = vmatprep.mubr.msk.f32.mxu0 %vm1722_vm0, %v1723_v12  ;;  %v161_v12 = vadd.f32 %v1929_v5, %v1889_v42 }
0x10ce   :  { %1606 = vmatprep.subr.bf16.mxu0 %v1721_v4 }
0x10d0   :  { %v1111_v1 = vld [vmem:[#allocation2 + $0x20] sm:$0xf] }
0x10d1   :  { %1608 = vmatpush3.bf16.msra.mxu0 %v1812_v16  ;;  %1120 = vst.msk [vmem:[#allocation3 + $0x10] sm:$0xf] %vm1115_vm10, %v1111_v1 }
0x10d2   :  { %1609 = vmatprep.subr.bf16.mxu0 %v1721_v4 }
0x10d5   :  { %1611 = vmatpush3.bf16.msra.mxu0 %v1832_v23 }
0x10d6   :  { %1612 = vmatprep.subr.bf16.mxu0 %v1721_v4 }
0x10d9   :  { %1614 = vmatpush3.bf16.msra.mxu0 %v1842_v27 }
0x119f   :  { %v841_v3 = vpop.f32.mrb[12].mxu0 }
0x11a0   :  { %v842_v8 = vadd.f32 %v841_v3, %v1882_v38  ;;  %v1464_v10 = vpop.f32.mrb[13].mxu0 }
0x11a1   :  { %v1152_v10 = vld [vmem:[#allocation2 + $0x1c] sm:$0xf] }
0x11a2   :  { %853 = vrot.lane.b32.xlu0 %v842_v8, %s1724_s16  ;;  %v845_v16 = vadd.f32 %v842_v8, %v161_v12 }
0x11a4   :  { %v1230_v11 = vmul.f32 -1.442695, %v845_v16 }
0x11a6   :  { %1654 = vpow2.f32 %v1230_v11 }
0x11b0   :  { %v1655_v13 = vpop.eup %1654 }
0x11b1   :  { %v849_v14 = vadd.f32 1.0, %v1655_v13 }
0x11b3   :  { %1656 = vrcp.f32 %v849_v14 }
0x11bd   :  { %v1657_v23 = vpop.eup %1656 }
0x1214   :  { %v854_v15 = vpop.permute.xlu0 %853 }
0x1215   :  { %v856_v4 = vmul.f32 %v1657_v23, %v854_v15  ;;  %v1159_v15 = vld [vmem:[#allocation2 + $0x14] sm:$0xf] }
0x1217   :  { %858 = vrot.lane.b32.xlu1 %v856_v4, %s1724_s16  ;;  %v1173_v4 = vld [vmem:[#allocation2 + $0x4] sm:$0xf] }
0x1289   :  { %v859_v27 = vpop.permute.xlu1 %858 }
0x128a   :  { %v861_v17 = vadd.f32 %v859_v27, %v161_v12 }
0x128c   :  { %1658 = vtanh.f32 %v861_v17 }
0x1296   :  { %v1659_v18 = vpop.eup %1658 }
0x1297   :  { %v863_v19 = vsub.f32 %v760_v60, %v1659_v18 }
0x1299   :  { %865 = vrot.lane.b32.xlu0 %v863_v19, %s1725_s29 }
0x130b   :  { %v866_v20 = vpop.permute.xlu0 %865 }
0x130c   :  { %v868_v5 = vmul.f32 %v1657_v23, %v866_v20  ;;  %v1145_v23 = vld [vmem:[#allocation2 + $0x24] sm:$0xf] }
0x130e   :  { %870 = vrot.lane.b32.xlu1 %v868_v5, %s1720_s30 }
0x1380   :  { %v871_v21 = vpop.permute.xlu1 %870 }
0x1381   :  { %v873_v22 = vadd.f32 %v1659_v18, %v871_v21 }
0x1383   :  { %880 = vrot.lane.b32.xlu1 %v873_v22, %s1725_s29  ;;  %875 = vrot.lane.b32.xlu0 %v873_v22, %s1724_s16 }
0x13f5   :  { %v881_v24 = vpop.permute.xlu1 %880  ;;  %v876_v25 = vpop.permute.xlu0 %875 }
0x13f6   :  { %879 = vst.msk [vmem:[#allocation2 + $0x28] sm:$0xff] %vm201_vm9, %v876_v25  ;;  %v883_v26 = vsel %vm201_vm9, %v876_v25, %v881_v24 }
0x13f7   :  { %v884_v28 = vmul.f32 %v1861_v32, %v883_v26 }
0x13f9   :  { %1482 = vmatmul.mubr.msk.f32.vlgmr.msra.gmra.mrb[6].mxu1 %vm44_vm1, %v884_v28 }
0x13fd   :  { %v1112_v29 = vld [vmem:[#allocation2 + $0x28] sm:$0xf]  ;;  %v1138_v7 = vld [vmem:[#allocation2 + $0x2c] sm:$0xf] }
0x13fe   :  { %1121 = vst.msk [vmem:[#allocation3 + $0x14] sm:$0xf] %vm1115_vm10, %v1112_v29 }
0x14cc   :  { %v954_v30 = vpop.f32.mrb[6].mxu1 }
0x14cd   :  { %v955_v31 = vadd.f32 %v954_v30, %v1882_v38  ;;  %v1483_v33 = vpop.f32.mrb[7].mxu1 }
0x14cf   :  { %966 = vrot.lane.b32.xlu0 %v955_v31, %s1724_s16  ;;  %v958_v34 = vadd.f32 %v955_v31, %v166_v2 }
0x14d1   :  { %v1232_v35 = vmul.f32 -1.442695, %v958_v34 }
0x14d3   :  { %1660 = vpow2.f32 %v1232_v35 }
0x14dd   :  { %v1661_v36 = vpop.eup %1660 }
0x14de   :  { %v962_v37 = vadd.f32 1.0, %v1661_v36 }
0x14e0   :  { %1662 = vrcp.f32 %v962_v37 }
0x14ea   :  { %v1663_v39 = vpop.eup %1662 }
0x1541   :  { %v967_v40 = vpop.permute.xlu0 %966 }
0x1542   :  { %v969_v41 = vmul.f32 %v1663_v39, %v967_v40 }
0x1544   :  { %971 = vrot.lane.b32.xlu1 %v969_v41, %s1724_s16 }
0x15b6   :  { %v972_v43 = vpop.permute.xlu1 %971 }
0x15b7   :  { %v974_v44 = vadd.f32 %v972_v43, %v166_v2 }
0x15b9   :  { %1664 = vtanh.f32 %v974_v44 }
0x15c3   :  { %v1665_v45 = vpop.eup %1664 }
0x15c4   :  { %v976_v46 = vsub.f32 %v873_v22, %v1665_v45 }
0x15c6   :  { %978 = vrot.lane.b32.xlu0 %v976_v46, %s1725_s29 }
0x1638   :  { %v979_v47 = vpop.permute.xlu0 %978 }
0x1639   :  { %v981_v9 = vmul.f32 %v1663_v39, %v979_v47 }
0x163b   :  { %983 = vrot.lane.b32.xlu1 %v981_v9, %s1720_s30 }
0x16ad   :  { %v984_v48 = vpop.permute.xlu1 %983 }
0x16ae   :  { %v986_v49 = vadd.f32 %v1665_v45, %v984_v48 }
0x16b0   :  { %993 = vrot.lane.b32.xlu1 %v986_v49, %s1725_s29  ;;  %988 = vrot.lane.b32.xlu0 %v986_v49, %s1724_s16 }
0x1722   :  { %v994_v50 = vpop.permute.xlu1 %993  ;;  %v989_v51 = vpop.permute.xlu0 %988 }
0x1723   :  { %992 = vst.msk [vmem:[#allocation2 + $0x30] sm:$0xff] %vm201_vm9, %v989_v51  ;;  %v996_v52 = vsel %vm201_vm9, %v989_v51, %v994_v50 }
0x1724   :  { %v997_v53 = vmul.f32 %v1861_v32, %v996_v52 }
0x1726   :  { %1501 = vmatmul.mubr.msk.f32.vlgmr.msra.gmra.mrb[14].mxu0 %vm44_vm1, %v997_v53 }
0x172a   :  { %v1113_v54 = vld [vmem:[#allocation2 + $0x30] sm:$0xf]  ;;  %v1131_v13 = vld [vmem:[#allocation2 + $0x34] sm:$0xf] }
0x172b   :  { %1122 = vst.msk [vmem:[#allocation3 + $0x18] sm:$0xf] %vm1115_vm10, %v1113_v54 }
0x17f9   :  { %v1067_v55 = vpop.f32.mrb[14].mxu0 }
0x17fa   :  { %v1068_v56 = vadd.f32 %v1067_v55, %v1882_v38  ;;  %v1502_v57 = vpop.f32.mrb[15].mxu0 }
0x17fc   :  { %1079 = vrot.lane.b32.xlu0 %v1068_v56, %s1724_s16  ;;  %v1071_v6 = vadd.f32 %v1068_v56, %v171_v58 }
0x17fe   :  { %v1234_v59 = vmul.f32 -1.442695, %v1071_v6 }
0x1800   :  { %1666 = vpow2.f32 %v1234_v59 }
0x180a   :  { %v1667_v60 = vpop.eup %1666 }
0x180b   :  { %v1075_v61 = vadd.f32 1.0, %v1667_v60 }
0x180d   :  { %1668 = vrcp.f32 %v1075_v61 }
0x1817   :  { %v1669_v32 = vpop.eup %1668 }
0x186e   :  { %v1080_v62 = vpop.permute.xlu0 %1079 }
0x186f   :  { %v1082_v63 = vmul.f32 %v1669_v32, %v1080_v62 }
0x1871   :  { %1084 = vrot.lane.b32.xlu1 %v1082_v63, %s1724_s16 }
0x18e3   :  { %v1085_v0 = vpop.permute.xlu1 %1084 }
0x18e4   :  { %v1087_v1 = vadd.f32 %v1085_v0, %v171_v58 }
0x18e6   :  { %1670 = vtanh.f32 %v1087_v1 }
0x18f0   :  { %v1671_v38 = vpop.eup %1670 }
0x18f1   :  { %v1089_v3 = vsub.f32 %v986_v49, %v1671_v38 }
0x18f3   :  { %1091 = vrot.lane.b32.xlu0 %v1089_v3, %s1725_s29 }
0x1965   :  { %v1092_v8 = vpop.permute.xlu0 %1091 }
0x1966   :  { %v1094_v42 = vmul.f32 %v1669_v32, %v1092_v8 }
0x1968   :  { %1096 = vrot.lane.b32.xlu1 %v1094_v42, %s1720_s30 }
0x196c   :  { %1140 = vrot.lane.b32.xlu1 %v1138_v7, %s1720_s30 }
0x1970   :  { %1154 = vrot.lane.b32.xlu1 %v1152_v10, %s1720_s30 }
0x19da   :  { %v1097_v12 = vpop.permute.xlu1 %1096 }
0x19db   :  { %v1099_v16 = vadd.f32 %v1671_v38, %v1097_v12 }
0x19dd   :  { %1101 = vrot.lane.b32.xlu0 %v1099_v16, %s1724_s16 }
0x19de   :  { %v1141_v11 = vpop.permute.xlu1 %1140 }
0x19df   :  { %1144 = vst.msk [vmem:[#allocation3 + $0x8] sm:$0xf] %vm1129_vm11, %v1141_v11 }
0x19e1   :  { %1133 = vrot.lane.b32.xlu0 %v1131_v13, %s1720_s30 }
0x19e2   :  { %v1155_v14 = vpop.permute.xlu1 %1154 }
0x19e3   :  { %1158 = vst.msk [vmem:[#allocation3 + $0x10] sm:$0xf] %vm1129_vm11, %v1155_v14 }
0x19e5   :  { %1147 = vrot.lane.b32.xlu0 %v1145_v23, %s1720_s30 }
0x19e9   :  { %1161 = vrot.lane.b32.xlu0 %v1159_v15, %s1720_s30 }
0x19ed   :  { %1175 = vrot.lane.b32.xlu0 %v1173_v4, %s1720_s30 }
0x1a4f   :  { %v1102_v27 = vpop.permute.xlu0 %1101 }
0x1a50   :  { %1105 = vst.msk [vmem:[#allocation2 + $0x38] sm:$0xff] %vm201_vm9, %v1102_v27  ;;  %1106 = vst.msk [vmem:[#allocation5] sm:$0xff] %vm201_vm9, %v1102_v27 }
0x1a51   :  { %1683 = shalt.err (!%p1680_p4)
}
0x1a52   :  { %s1684_s11 = scalar_lea.hbm %s2134_s7, 128 }
0x1a53   :  { %p1685_p5 = scmp.ne.s32.totalorder %s2134_s7, %s1684_s11  ;;  %p1688_p6 = scmp.lt.u32.totalorder %s1684_s11, %s2134_s7 }
0x1a55   :  { %p1690_p7 = pnand %p1688_p6, %p1685_p5 }
0x1a57   :  { %1693 = shalt.err (!%p1690_p7)
}
0x1a58   :  { %1201 = dma.vmem_to_hbm [thread:$0]  %s1199_s8, 128, %s2134_s7, [#allocation6]   ;;  %v1134_v17 = vpop.permute.xlu0 %1133  ;;  %v1124_v19 = vld [vmem:[#allocation2 + $0x3c] sm:$0xf]  ;;  %v1114_v20 = vld [vmem:[#allocation2 + $0x38] sm:$0xf] }
0x1a59   :  { %1137 = vst.msk [vmem:[#allocation3 + $0x4] sm:$0xf] %vm1129_vm11, %v1134_v17  ;;  %1126 = vrot.lane.b32.xlu1 %v1124_v19, %s1720_s30  ;;  %v1166_v21 = vld [vmem:[#allocation2 + $0xc] sm:$0xf]  ;;  %s1727_s7 = smov [#allocation3]  }
0x1a5a   :  { %1123 = vst.msk [vmem:[#allocation3 + $0x1c] sm:$0xf] %vm1115_vm10, %v1114_v20  ;;  %s1185_s17 = sshll.u32 %s1727_s7, 4  ;;  %s1186_s17 = int_to_ptr.vmem [resolvable:$true] %s1185_s17 }
0x1a5b   :  { %s1694_s18 = scalar_lea.vmem %s1186_s17, 512  ;;  %p1699_p9 = scmp.lt.s32.totalorder %s1186_s17, %s1186_s17 }
0x1a5c   :  { %v1148_v18 = vpop.permute.xlu0 %1147  ;;  %p1695_p8 = scmp.ne.s32.totalorder %s1186_s17, %s1694_s18  ;;  %p1700_p10 = scmp.lt.s32.totalorder %s1694_s18, %s1694_s18 }
0x1a5d   :  { %1151 = vst.msk [vmem:[#allocation3 + $0xc] sm:$0xf] %vm1129_vm11, %v1148_v18  ;;  %1168 = vrot.lane.b32.xlu1 %v1166_v21, %s1720_s30 }
0x1a5e   :  { %p1701_p11 = por %p1700_p10, %p1699_p9 }
0x1a60   :  { %v1162_v5 = vpop.permute.xlu0 %1161  ;;  %p1702_p12 = pnand %p1701_p11, %p1695_p8 }
0x1a61   :  { %1165 = vst.msk [vmem:[#allocation3 + $0x14] sm:$0xf] %vm1129_vm11, %v1162_v5 }
0x1a64   :  { %v1176_v22 = vpop.permute.xlu0 %1175 }
0x1a65   :  { %1179 = vst.msk [vmem:[#allocation3 + $0x1c] sm:$0xf] %vm1129_vm11, %v1176_v22 }
0x1acb   :  { %v1127_v24 = vpop.permute.xlu1 %1126 }
0x1acc   :  { %1130 = vst.msk [vmem:[#allocation3] sm:$0xf] %vm1129_vm11, %v1127_v24 }
0x1acf   :  { %v1169_v25 = vpop.permute.xlu1 %1168 }
0x1ad0   :  { %1172 = vst.msk [vmem:[#allocation3 + $0x18] sm:$0xf] %vm1129_vm11, %v1169_v25 }
0x1ad1   :  { %1705 = shalt.err (!%p1702_p12)
}
0x1ad2   :  { %s1706_s5 = scalar_lea.hbm %s2133_s6, 512 }
0x1ad3   :  { %p1707_p13 = scmp.ne.s32.totalorder %s2133_s6, %s1706_s5  ;;  %p1710_p0 = scmp.lt.u32.totalorder %s1706_s5, %s2133_s6 }
0x1ad5   :  { %p1712_p1 = pnand %p1710_p0, %p1707_p13 }
0x1ad7   :  { %1715 = shalt.err (!%p1712_p1)
}
0x1ad8   :  { %s1728_s23 = smov 4  }
0x1ad9   :  { %1191 = dma.vmem_to_hbm [thread:$0]  %s1186_s17, 512, %s2133_s6, [#allocation4], %s1724_s16, %s1724_s16, %s1728_s23  }
0x1ada   :  { %1716 = dma.done.wait [#allocation4], 512  }
0x1adb   :  { %1717 = vsyncadd [#allocation4], 4294966784 }
0x1adc   :  { %1718 = dma.done.wait [#allocation6], 128  }
0x1add   :  { %1719 = vsyncadd [#allocation6], 4294967168 }
0x1ade   :  { %1208 = vsyncpa [#allocation4], 1 }
0x1adf   :  { %1209 = vsyncpa [#allocation6], 1 }

</bundles_post_ra>
